<compile_context>
chip_gen: v6e
topology: v6e:2x2x1
jax: 0.10.0
libtpu: 0.0.40
codegen_flags: <defaults>
</compile_context>

<pallas_src>
import functools

import jax
import jax.numpy as jnp
from jax.experimental import pallas as pl
from jax.experimental.pallas import tpu as pltpu

K_IN = 28 * 28          # 784
K_PAD = 896             # 7 * 128, lane-aligned contraction dim
H = 512                 # hidden width
N_OUT = 10              # logits
N_PAD = 128             # lane-dense padded output width


def _round_up(v, m):
    return (v + m - 1) // m * m


def mlp_kernel(x_ref, w1_ref, b1_ref, w2_ref, b2_ref, w3_ref, b3_ref, out_ref):
    # Linear(896 -> 512) + ReLU  (zero-padded K, so math identical to 784 -> 512)
    h1 = jnp.dot(x_ref[...], w1_ref[...], preferred_element_type=jnp.float32)
    h1 = jnp.maximum(h1 + b1_ref[...], 0.0)
    # Linear(512 -> 512) + ReLU
    h2 = jnp.dot(h1.astype(jnp.bfloat16), w2_ref[...],
                 preferred_element_type=jnp.float32)
    h2 = jnp.maximum(h2 + b2_ref[...], 0.0)
    # Linear(512 -> 128)  (columns 10..127 are zero padding)
    logits = jnp.dot(h2.astype(jnp.bfloat16), w3_ref[...],
                     preferred_element_type=jnp.float32)
    out_ref[...] = (logits + b3_ref[...]).astype(out_ref.dtype)


def prepare_params(params_f32):
    """Pad + cast the f32 (in, out)-layout params for the kernel (done once)."""
    w1, b1, w2, b2, w3, b3 = params_f32
    w1p = jnp.pad(w1, ((0, K_PAD - K_IN), (0, 0))).astype(jnp.bfloat16)   # (896, 512)
    w2p = w2.astype(jnp.bfloat16)                                          # (512, 512)
    w3p = jnp.pad(w3, ((0, 0), (0, N_PAD - N_OUT))).astype(jnp.bfloat16)   # (512, 128)
    b1p = b1.astype(jnp.float32)                                           # (1, 512)
    b2p = b2.astype(jnp.float32)                                           # (1, 512)
    b3p = jnp.pad(b3, ((0, 0), (0, N_PAD - N_OUT))).astype(jnp.float32)    # (1, 128)
    return (w1p, b1p, w2p, b2p, w3p, b3p)


@functools.partial(jax.jit, static_argnames=("tm",))
def neural_network_forward(x, prepped_params, *, tm=256):
    """x: (B, 28, 28) float32.  Returns logits (B, 10) float32."""
    w1, b1, w2, b2, w3, b3 = prepped_params
    B = x.shape[0]

    # Batch tile: 256 rows keeps the MXU busy on v6e/v7x; for small batches round
    # up to a multiple of 16 (bf16 sublane packing) so we get one unmasked grid step.
    TM = tm if B >= tm else _round_up(B, 16)
    B_pad = _round_up(B, TM)

    # Flatten + pad (plain-JAX glue): rows -> 896 lanes, batch -> multiple of TM.
    # Cast to bf16 here so the kernel reads half the activation bytes from HBM.
    x_flat = x.reshape(B, K_IN).astype(jnp.bfloat16)
    x_flat = jnp.pad(x_flat, ((0, B_pad - B), (0, K_PAD - K_IN)))

    grid = (B_pad // TM,)

    # Resident (constant index_map) weight/bias specs; tiled x/out specs.
    resident = lambda shape: pl.BlockSpec(shape, lambda i: (0, 0))

    flops = 2 * B_pad * (K_PAD * H + H * H + H * N_PAD)
    bytes_accessed = (
        x_flat.size * 2                      # bf16 activations in
        + (w1.size + w2.size + w3.size) * 2  # bf16 weights (read once, VMEM-resident)
        + (b1.size + b2.size + b3.size) * 4  # f32 biases
        + B_pad * N_PAD * 4                  # f32 output
    )

    out_padded = pl.pallas_call(
        mlp_kernel,
        out_shape=jax.ShapeDtypeStruct((B_pad, N_PAD), jnp.float32),
        grid=grid,
        in_specs=[
            pl.BlockSpec((TM, K_PAD), lambda i: (i, 0)),   # x tile
            resident((K_PAD, H)),                          # w1
            resident((1, H)),                              # b1
            resident((H, H)),                              # w2
            resident((1, H)),                              # b2
            resident((H, N_PAD)),                          # w3
            resident((1, N_PAD)),                          # b3
        ],
        out_specs=pl.BlockSpec((TM, N_PAD), lambda i: (i, 0)),
        compiler_params=pltpu.CompilerParams(
            dimension_semantics=("parallel",),             # megacore batch sharding (v7x)
        ),
        cost_estimate=pl.CostEstimate(
            flops=flops, transcendentals=0, bytes_accessed=bytes_accessed),
    )(x_flat, w1, b1, w2, b2, w3, b3)

    # Strip batch padding and the 10->128 lane padding.
    return out_padded[:B, :N_OUT]


def init_params(key):
    """Deterministic init mirroring nn.Linear's U(-1/sqrt(fan_in), +1/sqrt(fan_in))."""
    def linear(key, fan_in, fan_out):
        kw, kb = jax.random.split(key)
        bound = 1.0 / jnp.sqrt(fan_in)
        w = jax.random.uniform(kw, (fan_in, fan_out), jnp.float32, -bound, bound)
        b = jax.random.uniform(kb, (1, fan_out), jnp.float32, -bound, bound)
        return w, b

    k1, k2, k3 = jax.random.split(key, 3)
    w1, b1 = linear(k1, K_IN, H)
    w2, b2 = linear(k2, H, H)
    w3, b3 = linear(k3, H, N_OUT)
    return (w1, b1, w2, b2, w3, b3)


if __name__ == "__main__":
    key = jax.random.PRNGKey(0)
    kx, kp = jax.random.split(key)

    B = 8  # small batch
    x = jax.random.normal(kx, (B, 28, 28), dtype=jnp.float32)
    params = init_params(kp)
    prepped = prepare_params(params)

    logits = neural_network_forward(x, prepped)
    logits = jax.block_until_ready(logits)

    # Reference check in plain JAX f32 (same math; tolerance loosened for bf16 weights).
    w1, b1, w2, b2, w3, b3 = params
    xf = x.reshape(B, -1)
    ref = jnp.maximum(xf @ w1 + b1, 0.0)
    ref = jnp.maximum(ref @ w2 + b2, 0.0)
    ref = ref @ w3 + b3

    assert logits.shape == (B, N_OUT)
    assert bool(jnp.allclose(logits, ref, atol=3e-2, rtol=3e-2)), (
        float(jnp.max(jnp.abs(logits - ref))))

    print("KERNEL_OK")
</pallas_src>

<mosaic_0001>
module attributes {stable_mosaic.version = 11 : i64} {
  func.func @mlp_kernel(%arg0: i32, %arg1: memref<16x896xbf16, #tpu.memory_space<vmem>>, %arg2: memref<896x512xbf16, #tpu.memory_space<vmem>>, %arg3: memref<1x512xf32, #tpu.memory_space<vmem>>, %arg4: memref<512x512xbf16, #tpu.memory_space<vmem>>, %arg5: memref<1x512xf32, #tpu.memory_space<vmem>>, %arg6: memref<512x128xbf16, #tpu.memory_space<vmem>>, %arg7: memref<1x128xf32, #tpu.memory_space<vmem>>, %arg8: memref<16x128xf32, #tpu.memory_space<vmem>>) attributes {dimension_semantics = [#tpu.dimension_semantics<parallel>], iteration_bounds = array<i64: 1>, scalar_prefetch = 0 : i64, scratch_operands = 0 : i64, tpu.core_type = #tpu.core_type<tc>, window_params = [{transform_indices = @transform_0, window_bounds = array<i64: 16, 896>}, {pipeline_mode = #tpu.pipeline_mode<synchronous>, transform_indices = @transform_1, window_bounds = array<i64: 896, 512>}, {pipeline_mode = #tpu.pipeline_mode<synchronous>, transform_indices = @transform_2, window_bounds = array<i64: 1, 512>}, {pipeline_mode = #tpu.pipeline_mode<synchronous>, transform_indices = @transform_3, window_bounds = array<i64: 512, 512>}, {pipeline_mode = #tpu.pipeline_mode<synchronous>, transform_indices = @transform_4, window_bounds = array<i64: 1, 512>}, {pipeline_mode = #tpu.pipeline_mode<synchronous>, transform_indices = @transform_5, window_bounds = array<i64: 512, 128>}, {pipeline_mode = #tpu.pipeline_mode<synchronous>, transform_indices = @transform_6, window_bounds = array<i64: 1, 128>}, {transform_indices = @transform_7, window_bounds = array<i64: 16, 128>}]} {
    %c0 = arith.constant 0 : index
    %c0_0 = arith.constant 0 : index
    %0 = vector.load %arg1[%c0, %c0_0] : memref<16x896xbf16, #tpu.memory_space<vmem>>, vector<16x896xbf16>
    %c0_1 = arith.constant 0 : index
    %c0_2 = arith.constant 0 : index
    %1 = vector.load %arg2[%c0_1, %c0_2] : memref<896x512xbf16, #tpu.memory_space<vmem>>, vector<896x512xbf16>
    %cst = arith.constant dense<0.000000e+00> : vector<16x512xf32>
    %2 = tpu.matmul %0, %1, %cst {dimension_numbers = #tpu.dot_dimension_numbers<[1], [0], [0], [1], [0, 0, 1, 1], [], []>} : vector<16x896xbf16>, vector<896x512xbf16>, vector<16x512xf32> -> vector<16x512xf32>
    %c0_3 = arith.constant 0 : index
    %c0_4 = arith.constant 0 : index
    %3 = vector.load %arg3[%c0_3, %c0_4] : memref<1x512xf32, #tpu.memory_space<vmem>>, vector<1x512xf32>
    %4 = vector.broadcast %3 : vector<1x512xf32> to vector<16x512xf32>
    %5 = arith.addf %2, %4 : vector<16x512xf32>
    %cst_5 = arith.constant 0.000000e+00 : f32
    %6 = vector.broadcast %cst_5 : f32 to vector<16x512xf32>
    %7 = arith.maximumf %5, %6 : vector<16x512xf32>
    %8 = arith.truncf %7 : vector<16x512xf32> to vector<16x512xbf16>
    %c0_6 = arith.constant 0 : index
    %c0_7 = arith.constant 0 : index
    %9 = vector.load %arg4[%c0_6, %c0_7] : memref<512x512xbf16, #tpu.memory_space<vmem>>, vector<512x512xbf16>
    %cst_8 = arith.constant dense<0.000000e+00> : vector<16x512xf32>
    %10 = tpu.matmul %8, %9, %cst_8 {dimension_numbers = #tpu.dot_dimension_numbers<[1], [0], [0], [1], [0, 0, 1, 1], [], []>} : vector<16x512xbf16>, vector<512x512xbf16>, vector<16x512xf32> -> vector<16x512xf32>
    %c0_9 = arith.constant 0 : index
    %c0_10 = arith.constant 0 : index
    %11 = vector.load %arg5[%c0_9, %c0_10] : memref<1x512xf32, #tpu.memory_space<vmem>>, vector<1x512xf32>
    %12 = vector.broadcast %11 : vector<1x512xf32> to vector<16x512xf32>
    %13 = arith.addf %10, %12 : vector<16x512xf32>
    %cst_11 = arith.constant 0.000000e+00 : f32
    %14 = vector.broadcast %cst_11 : f32 to vector<16x512xf32>
    %15 = arith.maximumf %13, %14 : vector<16x512xf32>
    %16 = arith.truncf %15 : vector<16x512xf32> to vector<16x512xbf16>
    %c0_12 = arith.constant 0 : index
    %c0_13 = arith.constant 0 : index
    %17 = vector.load %arg6[%c0_12, %c0_13] : memref<512x128xbf16, #tpu.memory_space<vmem>>, vector<512x128xbf16>
    %cst_14 = arith.constant dense<0.000000e+00> : vector<16x128xf32>
    %18 = tpu.matmul %16, %17, %cst_14 {dimension_numbers = #tpu.dot_dimension_numbers<[1], [0], [0], [1], [0, 0, 1, 1], [], []>} : vector<16x512xbf16>, vector<512x128xbf16>, vector<16x128xf32> -> vector<16x128xf32>
    %c0_15 = arith.constant 0 : index
    %c0_16 = arith.constant 0 : index
    %19 = vector.load %arg7[%c0_15, %c0_16] : memref<1x128xf32, #tpu.memory_space<vmem>>, vector<1x128xf32>
    %20 = vector.broadcast %19 : vector<1x128xf32> to vector<16x128xf32>
    %21 = arith.addf %18, %20 : vector<16x128xf32>
    %c0_17 = arith.constant 0 : index
    %c0_18 = arith.constant 0 : index
    %22 = vector.load %arg8[%c0_17, %c0_18] : memref<16x128xf32, #tpu.memory_space<vmem>>, vector<16x128xf32>
    tpu.vector_store %arg8[%c0_17, %c0_18], %21 {strides = array<i32>} : memref<16x128xf32, #tpu.memory_space<vmem>>, vector<16x128xf32>,
    return
  }
  func.func @transform_0(%arg0: i32) -> (i32, i32) {
    %c0_i32 = arith.constant 0 : i32
    %c0_i32_0 = arith.constant 0 : i32
    return %arg0, %c0_i32 : i32, i32
  }
  func.func @transform_1(%arg0: i32) -> (i32, i32) {
    %c0_i32 = arith.constant 0 : i32
    %c0_i32_0 = arith.constant 0 : i32
    %c0_i32_1 = arith.constant 0 : i32
    return %c0_i32, %c0_i32_0 : i32, i32
  }
  func.func @transform_2(%arg0: i32) -> (i32, i32) {
    %c0_i32 = arith.constant 0 : i32
    %c0_i32_0 = arith.constant 0 : i32
    %c0_i32_1 = arith.constant 0 : i32
    return %c0_i32, %c0_i32_0 : i32, i32
  }
  func.func @transform_3(%arg0: i32) -> (i32, i32) {
    %c0_i32 = arith.constant 0 : i32
    %c0_i32_0 = arith.constant 0 : i32
    %c0_i32_1 = arith.constant 0 : i32
    return %c0_i32, %c0_i32_0 : i32, i32
  }
  func.func @transform_4(%arg0: i32) -> (i32, i32) {
    %c0_i32 = arith.constant 0 : i32
    %c0_i32_0 = arith.constant 0 : i32
    %c0_i32_1 = arith.constant 0 : i32
    return %c0_i32, %c0_i32_0 : i32, i32
  }
  func.func @transform_5(%arg0: i32) -> (i32, i32) {
    %c0_i32 = arith.constant 0 : i32
    %c0_i32_0 = arith.constant 0 : i32
    %c0_i32_1 = arith.constant 0 : i32
    return %c0_i32, %c0_i32_0 : i32, i32
  }
  func.func @transform_6(%arg0: i32) -> (i32, i32) {
    %c0_i32 = arith.constant 0 : i32
    %c0_i32_0 = arith.constant 0 : i32
    %c0_i32_1 = arith.constant 0 : i32
    return %c0_i32, %c0_i32_0 : i32, i32
  }
  func.func @transform_7(%arg0: i32) -> (i32, i32) {
    %c0_i32 = arith.constant 0 : i32
    %c0_i32_0 = arith.constant 0 : i32
    return %arg0, %c0_i32 : i32, i32
  }
}

</mosaic_0001>

<bundles_post_ra>
// kernel: neural_network_forward.1
= control target key start
LH: loop header
LB: loop body
LE: loop exit
PB: predicated region body
PF: predicated region fallthrough
CT: control target
= control target key end

     0   :  { %12 = vsyncpa [#allocation3], 0  ;;  %s4452_s0 = inlined_call_operand.vmem [shape: bf16[16,896], index: 0, kind: input, shape index: {}]   ;;  %s4453_s1 = inlined_call_operand.hbm [shape: bf16[896,512], index: 1, kind: input, shape index: {}]   ;;  %s4454_s2 = inlined_call_operand.vmem [shape: f32[1,512], index: 2, kind: input, shape index: {}]   ;;  %s4455_s3 = inlined_call_operand.hbm [shape: bf16[512,512], index: 3, kind: input, shape index: {}]   ;;  %s4456_s4 = inlined_call_operand.vmem [shape: f32[1,512], index: 4, kind: input, shape index: {}]   ;;  %s4457_s5 = inlined_call_operand.vmem [shape: bf16[512,128], index: 5, kind: input, shape index: {}]   ;;  %s4458_s6 = inlined_call_operand.vmem [shape: f32[1,128], index: 6, kind: input, shape index: {}]   ;;  %s4459_s7 = inlined_call_operand.vmem [shape: f32[16,128], index: 7, kind: output, shape index: {}]  }
   0x1   :  { %13 = vsyncpa [#allocation5], 0  ;;  %s4205_s24 = smov [#allocation2]  }
   0x2   :  { %s21_s25 = sshll.u32 %s4205_s24, 4  ;;  %s22_s25 = int_to_ptr.vmem [resolvable:$true] %s21_s25 }
   0x3   :  { %s4169_s26 = scalar_lea.vmem %s22_s25, 28672  ;;  %p4174_p1 = scmp.lt.s32.totalorder %s22_s25, %s22_s25 }
   0x4   :  { %p4170_p0 = scmp.ne.s32.totalorder %s22_s25, %s4169_s26  ;;  %p4175_p2 = scmp.lt.s32.totalorder %s4169_s26, %s4169_s26 }
   0x6   :  { %p4176_p3 = por %p4175_p2, %p4174_p1 }
   0x8   :  { %p4177_p4 = pnand %p4176_p3, %p4170_p0 }
   0xa   :  { %4180 = shalt.err (!%p4177_p4)
}
   0xb   :  { %s4206_s27 = smov 256   ;;  %s4207_s28 = smov 16  }
   0xc   :  { %27 = dma.hbm_to_vmem [thread:$0]  %s4453_s1, 28672, %s22_s25, [#allocation3], %s4206_s27, %s4206_s27, %s4207_s28  }
   0xd   :  { %s4208_s8 = smov [#allocation4]  }
   0xe   :  { %s35_s9 = sshll.u32 %s4208_s8, 4  ;;  %s36_s9 = int_to_ptr.vmem [resolvable:$true] %s35_s9 }
   0xf   :  { %s4189_s10 = scalar_lea.vmem %s36_s9, 16384  ;;  %p4194_p6 = scmp.lt.s32.totalorder %s36_s9, %s36_s9 }
  0x10   :  { %p4190_p5 = scmp.ne.s32.totalorder %s36_s9, %s4189_s10  ;;  %p4195_p7 = scmp.lt.s32.totalorder %s4189_s10, %s4189_s10 }
  0x12   :  { %p4196_p8 = por %p4195_p7, %p4194_p6 }
  0x14   :  { %p4197_p9 = pnand %p4196_p8, %p4190_p5 }
  0x16   :  { %4200 = shalt.err (!%p4197_p9)
}
  0x17   :  { %41 = dma.hbm_to_vmem [thread:$0]  %s4455_s3, 16384, %s36_s9, [#allocation5], %s4206_s27, %s4206_s27, %s4207_s28  }
  0x18   :  { %4201 = dma.done.wait [#allocation3], 28672  }
  0x19   :  { %4202 = vsyncadd [#allocation3], 4294938624 }
  0x1a   :  { %4203 = dma.done.wait [#allocation5], 16384  }
  0x1b   :  { %4204 = vsyncadd [#allocation5], 4294950912  ;;  %v3589_v0 = vld [vmem:[#allocation2 + $0xe4] ss:$16 sps:$4 sm:$0xff]   ;;  %v3593_v2 = vld [vmem:[#allocation2 + $0xe0] ss:$16 sps:$4 sm:$0xff]  }
  0x1c   :  { %v3591_v1 = vld [vmem:[#allocation2 + $0x2e4] ss:$16 sps:$4 sm:$0xff]   ;;  %1465 = vmatprep.subr.bf16.mxu0 %v3589_v0  ;;  %v3594_v3 = vld [vmem:[#allocation2 + $0x2e0] ss:$16 sps:$4 sm:$0xff]   ;;  %v4264_v51 = vld [vmem:[%s4452_s0 + $0xc] ss:$28 sps:$4 sm:$0xff]  }
  0x1d   :  { %1508 = vmatprep.subr.bf16.mxu1 %v3591_v1  ;;  %v3595_v4 = vld [vmem:[#allocation2 + $0xc4] ss:$16 sps:$4 sm:$0xff]   ;;  %1466 = vmatpush1.bf16.msra.mxu0 %v3593_v2  ;;  %v3599_v6 = vld [vmem:[#allocation2 + $0xc0] ss:$16 sps:$4 sm:$0xff]  }
  0x1e   :  { %1509 = vmatpush1.bf16.msra.mxu1 %v3594_v3  ;;  %v3597_v5 = vld [vmem:[#allocation2 + $0x2c4] ss:$16 sps:$4 sm:$0xff]   ;;  %1467 = vmatprep.subr.bf16.mxu0 %v3595_v4  ;;  %v3600_v7 = vld [vmem:[#allocation2 + $0x2c0] ss:$16 sps:$4 sm:$0xff]  }
  0x1f   :  { %1510 = vmatprep.subr.bf16.mxu1 %v3597_v5  ;;  %v3601_v8 = vld [vmem:[#allocation2 + $0xa4] ss:$16 sps:$4 sm:$0xff]   ;;  %v3605_v10 = vld [vmem:[#allocation2 + $0xa0] ss:$16 sps:$4 sm:$0xff]   ;;  %1540 = vmatprep.mubr.bf16.mxu1 %v4264_v51 }
  0x20   :  { %v3603_v9 = vld [vmem:[#allocation2 + $0x2a4] ss:$16 sps:$4 sm:$0xff]   ;;  %v3606_v11 = vld [vmem:[#allocation2 + $0x2a0] ss:$16 sps:$4 sm:$0xff]  }
  0x21   :  { %1468 = vmatpush1.bf16.msra.mxu0 %v3599_v6  ;;  %v3607_v12 = vld [vmem:[#allocation2 + $0x84] ss:$16 sps:$4 sm:$0xff]   ;;  %v3611_v14 = vld [vmem:[#allocation2 + $0x80] ss:$16 sps:$4 sm:$0xff]  }
  0x22   :  { %1511 = vmatpush1.bf16.msra.mxu1 %v3600_v7  ;;  %1469 = vmatprep.subr.bf16.mxu0 %v3601_v8  ;;  %v3609_v13 = vld [vmem:[#allocation2 + $0x284] ss:$16 sps:$4 sm:$0xff]   ;;  %v3612_v15 = vld [vmem:[#allocation2 + $0x280] ss:$16 sps:$4 sm:$0xff]  }
  0x23   :  { %1512 = vmatprep.subr.bf16.mxu1 %v3603_v9  ;;  %v3613_v16 = vld [vmem:[#allocation2 + $0x64] ss:$16 sps:$4 sm:$0xff]   ;;  %v3617_v18 = vld [vmem:[#allocation2 + $0x60] ss:$16 sps:$4 sm:$0xff]  }
  0x24   :  { %v3615_v17 = vld [vmem:[#allocation2 + $0x264] ss:$16 sps:$4 sm:$0xff]   ;;  %v3618_v19 = vld [vmem:[#allocation2 + $0x260] ss:$16 sps:$4 sm:$0xff]  }
  0x25   :  { %1470 = vmatpush1.bf16.msra.mxu0 %v3605_v10  ;;  %v3619_v20 = vld [vmem:[#allocation2 + $0x44] ss:$16 sps:$4 sm:$0xff]   ;;  %v3623_v22 = vld [vmem:[#allocation2 + $0x40] ss:$16 sps:$4 sm:$0xff]  }
  0x26   :  { %1513 = vmatpush1.bf16.msra.mxu1 %v3606_v11  ;;  %1471 = vmatprep.subr.bf16.mxu0 %v3607_v12  ;;  %v3621_v21 = vld [vmem:[#allocation2 + $0x244] ss:$16 sps:$4 sm:$0xff]   ;;  %v3624_v23 = vld [vmem:[#allocation2 + $0x240] ss:$16 sps:$4 sm:$0xff]  }
  0x27   :  { %1514 = vmatprep.subr.bf16.mxu1 %v3609_v13  ;;  %v3625_v24 = vld [vmem:[#allocation2 + $0x24] ss:$16 sps:$4 sm:$0xff]   ;;  %v3629_v26 = vld [vmem:[#allocation2 + $0x20] ss:$16 sps:$4 sm:$0xff]  }
  0x28   :  { %v3627_v25 = vld [vmem:[#allocation2 + $0x224] ss:$16 sps:$4 sm:$0xff]   ;;  %v3630_v27 = vld [vmem:[#allocation2 + $0x220] ss:$16 sps:$4 sm:$0xff]  }
  0x29   :  { %1472 = vmatpush1.bf16.msra.mxu0 %v3611_v14  ;;  %v3631_v28 = vld [vmem:[#allocation2 + $0x4] ss:$16 sps:$4 sm:$0xff]   ;;  %v3635_v30 = vld [vmem:[#allocation2] ss:$16 sps:$4 sm:$0xff]   ;;  %v4209_v14 = vmov 0  }
  0x2a   :  { %1515 = vmatpush1.bf16.msra.mxu1 %v3612_v15  ;;  %1473 = vmatprep.subr.bf16.mxu0 %v3613_v16  ;;  %v3633_v29 = vld [vmem:[#allocation2 + $0x204] ss:$16 sps:$4 sm:$0xff]   ;;  %v3636_v31 = vld [vmem:[#allocation2 + $0x200] ss:$16 sps:$4 sm:$0xff]  }
  0x2b   :  { %1516 = vmatprep.subr.bf16.mxu1 %v3615_v17  ;;  %v3637_v32 = vld [vmem:[#allocation2 + $0x1e4] ss:$16 sps:$4 sm:$0xff]   ;;  %v3641_v34 = vld [vmem:[#allocation2 + $0x1e0] ss:$16 sps:$4 sm:$0xff]  }
  0x2c   :  { %v3639_v33 = vld [vmem:[#allocation2 + $0x3e4] ss:$16 sps:$4 sm:$0xff]   ;;  %v3642_v35 = vld [vmem:[#allocation2 + $0x3e0] ss:$16 sps:$4 sm:$0xff]  }
  0x2d   :  { %1474 = vmatpush1.bf16.msra.mxu0 %v3617_v18  ;;  %v3643_v36 = vld [vmem:[#allocation2 + $0x1c4] ss:$16 sps:$4 sm:$0xff]   ;;  %v3647_v38 = vld [vmem:[#allocation2 + $0x1c0] ss:$16 sps:$4 sm:$0xff]  }
  0x2e   :  { %1517 = vmatpush1.bf16.msra.mxu1 %v3618_v19  ;;  %1475 = vmatprep.subr.bf16.mxu0 %v3619_v20  ;;  %v3645_v37 = vld [vmem:[#allocation2 + $0x3c4] ss:$16 sps:$4 sm:$0xff]   ;;  %v3648_v39 = vld [vmem:[#allocation2 + $0x3c0] ss:$16 sps:$4 sm:$0xff]  }
  0x2f   :  { %1518 = vmatprep.subr.bf16.mxu1 %v3621_v21  ;;  %v3649_v40 = vld [vmem:[#allocation2 + $0x1a4] ss:$16 sps:$4 sm:$0xff]   ;;  %v3653_v42 = vld [vmem:[#allocation2 + $0x1a0] ss:$16 sps:$4 sm:$0xff]  }
  0x30   :  { %v3651_v41 = vld [vmem:[#allocation2 + $0x3a4] ss:$16 sps:$4 sm:$0xff]   ;;  %v3654_v43 = vld [vmem:[#allocation2 + $0x3a0] ss:$16 sps:$4 sm:$0xff]  }
  0x31   :  { %1476 = vmatpush1.bf16.msra.mxu0 %v3623_v22  ;;  %v3655_v44 = vld [vmem:[#allocation2 + $0x184] ss:$16 sps:$4 sm:$0xff]   ;;  %v3659_v46 = vld [vmem:[#allocation2 + $0x180] ss:$16 sps:$4 sm:$0xff]  }
  0x32   :  { %1519 = vmatpush1.bf16.msra.mxu1 %v3624_v23  ;;  %1477 = vmatprep.subr.bf16.mxu0 %v3625_v24  ;;  %v3657_v45 = vld [vmem:[#allocation2 + $0x384] ss:$16 sps:$4 sm:$0xff]   ;;  %v3660_v47 = vld [vmem:[#allocation2 + $0x380] ss:$16 sps:$4 sm:$0xff]  }
  0x33   :  { %1520 = vmatprep.subr.bf16.mxu1 %v3627_v25  ;;  %v3661_v48 = vld [vmem:[#allocation2 + $0x164] ss:$16 sps:$4 sm:$0xff]   ;;  %v3665_v52 = vld [vmem:[#allocation2 + $0x160] ss:$16 sps:$4 sm:$0xff]  }
  0x34   :  { %v4259_v49 = vld [vmem:[%s4452_s0 + $0x4] ss:$28 sps:$4 sm:$0xff]  }
  0x35   :  { %1478 = vmatpush1.bf16.msra.mxu0 %v3629_v26  ;;  %v3663_v50 = vld [vmem:[#allocation2 + $0x364] ss:$16 sps:$4 sm:$0xff]   ;;  %1497 = vmatprep.mubr.bf16.mxu0 %v4259_v49  ;;  %v3666_v53 = vld [vmem:[#allocation2 + $0x360] ss:$16 sps:$4 sm:$0xff]  }
  0x36   :  { %1521 = vmatpush1.bf16.msra.mxu1 %v3630_v27  ;;  %1479 = vmatprep.subr.bf16.mxu0 %v3631_v28  ;;  %v3667_v54 = vld [vmem:[#allocation2 + $0x144] ss:$16 sps:$4 sm:$0xff]   ;;  %v3671_v56 = vld [vmem:[#allocation2 + $0x140] ss:$16 sps:$4 sm:$0xff]  }
  0x37   :  { %1522 = vmatprep.subr.bf16.mxu1 %v3633_v29  ;;  %v3669_v55 = vld [vmem:[#allocation2 + $0x344] ss:$16 sps:$4 sm:$0xff]   ;;  %v3672_v57 = vld [vmem:[#allocation2 + $0x340] ss:$16 sps:$4 sm:$0xff]  }
  0x38   :  { %v3673_v58 = vld [vmem:[#allocation2 + $0x124] ss:$16 sps:$4 sm:$0xff]   ;;  %v3677_v60 = vld [vmem:[#allocation2 + $0x120] ss:$16 sps:$4 sm:$0xff]  }
  0x39   :  { %1480 = vmatpush1.bf16.msra.mxu0 %v3635_v30  ;;  %v3675_v59 = vld [vmem:[#allocation2 + $0x324] ss:$16 sps:$4 sm:$0xff]   ;;  %v3678_v61 = vld [vmem:[#allocation2 + $0x320] ss:$16 sps:$4 sm:$0xff]  }
  0x3a   :  { %1523 = vmatpush1.bf16.msra.mxu1 %v3636_v31  ;;  %1481 = vmatprep.subr.bf16.mxu0 %v3637_v32  ;;  %v3679_v62 = vld [vmem:[#allocation2 + $0x104] ss:$16 sps:$4 sm:$0xff]   ;;  %v3683_v0 = vld [vmem:[#allocation2 + $0x100] ss:$16 sps:$4 sm:$0xff]  }
  0x3b   :  { %1524 = vmatprep.subr.bf16.mxu1 %v3639_v33  ;;  %v3681_v63 = vld [vmem:[#allocation2 + $0x304] ss:$16 sps:$4 sm:$0xff]   ;;  %v3684_v1 = vld [vmem:[#allocation2 + $0x300] ss:$16 sps:$4 sm:$0xff]  }
  0x3c   :  { %v3693_v2 = vld [vmem:[#allocation2 + $0x4e4] ss:$16 sps:$4 sm:$0xff]   ;;  %v4271_v4 = vld [vmem:[%s4452_s0] ss:$28 sps:$4 sm:$0xff]  }
  0x3d   :  { %1482 = vmatpush2.bf16.msra.mxu0 %v3641_v34  ;;  %v3696_v3 = vld [vmem:[#allocation2 + $0x6e4] ss:$16 sps:$4 sm:$0xff]   ;;  %v3691_v6 = vld [vmem:[#allocation2 + $0x4e0] ss:$16 sps:$4 sm:$0xff]  }
  0x3e   :  { %1525 = vmatpush2.bf16.msra.mxu1 %v3642_v35  ;;  %1483 = vmatprep.subr.bf16.mxu0 %v3643_v36  ;;  %v3688_v5 = vld [vmem:[%s4452_s0 + $0x8] ss:$28 sps:$4 sm:$0xff]   ;;  %v3694_v7 = vld [vmem:[#allocation2 + $0x6e0] ss:$16 sps:$4 sm:$0xff]  }
  0x3f   :  { %1526 = vmatprep.subr.bf16.mxu1 %v3645_v37  ;;  %v3699_v8 = vld [vmem:[#allocation2 + $0x4c4] ss:$16 sps:$4 sm:$0xff]   ;;  %v3697_v10 = vld [vmem:[#allocation2 + $0x4c0] ss:$16 sps:$4 sm:$0xff]  }
  0x40   :  { %v3702_v9 = vld [vmem:[#allocation2 + $0x6c4] ss:$16 sps:$4 sm:$0xff]   ;;  %v3700_v11 = vld [vmem:[#allocation2 + $0x6c0] ss:$16 sps:$4 sm:$0xff]  }
  0x41   :  { %1484 = vmatpush2.bf16.msra.mxu0 %v3647_v38  ;;  %v3705_v12 = vld [vmem:[#allocation2 + $0x4a4] ss:$16 sps:$4 sm:$0xff]   ;;  %v3703_v15 = vld [vmem:[#allocation2 + $0x4a0] ss:$16 sps:$4 sm:$0xff]  }
  0x42   :  { %1527 = vmatpush2.bf16.msra.mxu1 %v3648_v39  ;;  %1485 = vmatprep.subr.bf16.mxu0 %v3649_v40  ;;  %v3708_v13 = vld [vmem:[#allocation2 + $0x6a4] ss:$16 sps:$4 sm:$0xff]   ;;  %v3706_v16 = vld [vmem:[#allocation2 + $0x6a0] ss:$16 sps:$4 sm:$0xff]   ;;  %v3745_v39 = vld [vmem:[#allocation2 + $0xec] ss:$16 sps:$4 sm:$0xff]  }
  0x43   :  { %1528 = vmatprep.subr.bf16.mxu1 %v3651_v41  ;;  %v3711_v17 = vld [vmem:[#allocation2 + $0x484] ss:$16 sps:$4 sm:$0xff]   ;;  %v3709_v19 = vld [vmem:[#allocation2 + $0x480] ss:$16 sps:$4 sm:$0xff]  }
  0x44   :  { %v3714_v18 = vld [vmem:[#allocation2 + $0x684] ss:$16 sps:$4 sm:$0xff]   ;;  %v3712_v20 = vld [vmem:[#allocation2 + $0x680] ss:$16 sps:$4 sm:$0xff]  }
  0x45   :  { %1486 = vmatpush2.bf16.msra.mxu0 %v3653_v42  ;;  %v3717_v21 = vld [vmem:[#allocation2 + $0x464] ss:$16 sps:$4 sm:$0xff]   ;;  %v3715_v23 = vld [vmem:[#allocation2 + $0x460] ss:$16 sps:$4 sm:$0xff]   ;;  %v3743_v42 = vld [vmem:[#allocation2 + $0xe8] ss:$16 sps:$4 sm:$0xff]  }
  0x46   :  { %1529 = vmatpush2.bf16.msra.mxu1 %v3654_v43  ;;  %1487 = vmatprep.subr.bf16.mxu0 %v3655_v44  ;;  %v3720_v22 = vld [vmem:[#allocation2 + $0x664] ss:$16 sps:$4 sm:$0xff]   ;;  %v3718_v24 = vld [vmem:[#allocation2 + $0x660] ss:$16 sps:$4 sm:$0xff]   ;;  %v3751_v44 = vld [vmem:[#allocation2 + $0xcc] ss:$16 sps:$4 sm:$0xff]  }
  0x47   :  { %1530 = vmatprep.subr.bf16.mxu1 %v3657_v45  ;;  %v3723_v25 = vld [vmem:[#allocation2 + $0x444] ss:$16 sps:$4 sm:$0xff]   ;;  %v3721_v27 = vld [vmem:[#allocation2 + $0x440] ss:$16 sps:$4 sm:$0xff]  }
  0x48   :  { %v3726_v26 = vld [vmem:[#allocation2 + $0x644] ss:$16 sps:$4 sm:$0xff]   ;;  %v3724_v28 = vld [vmem:[#allocation2 + $0x640] ss:$16 sps:$4 sm:$0xff]  }
  0x49   :  { %1488 = vmatpush2.bf16.msra.mxu0 %v3659_v46  ;;  %v3729_v29 = vld [vmem:[#allocation2 + $0x424] ss:$16 sps:$4 sm:$0xff]   ;;  %v3727_v31 = vld [vmem:[#allocation2 + $0x420] ss:$16 sps:$4 sm:$0xff]   ;;  %v3749_v46 = vld [vmem:[#allocation2 + $0xc8] ss:$16 sps:$4 sm:$0xff]  }
  0x4a   :  { %1531 = vmatpush2.bf16.msra.mxu1 %v3660_v47  ;;  %1489 = vmatprep.subr.bf16.mxu0 %v3661_v48  ;;  %v3732_v30 = vld [vmem:[#allocation2 + $0x624] ss:$16 sps:$4 sm:$0xff]   ;;  %v3730_v32 = vld [vmem:[#allocation2 + $0x620] ss:$16 sps:$4 sm:$0xff]   ;;  %v3757_v48 = vld [vmem:[#allocation2 + $0xac] ss:$16 sps:$4 sm:$0xff]  }
  0x4b   :  { %1532 = vmatprep.subr.bf16.mxu1 %v3663_v50  ;;  %v3735_v33 = vld [vmem:[#allocation2 + $0x404] ss:$16 sps:$4 sm:$0xff]   ;;  %v3733_v36 = vld [vmem:[#allocation2 + $0x400] ss:$16 sps:$4 sm:$0xff]  }
  0x4c   :  { %v3738_v34 = vld [vmem:[#allocation2 + $0x604] ss:$16 sps:$4 sm:$0xff]   ;;  %v3736_v37 = vld [vmem:[#allocation2 + $0x600] ss:$16 sps:$4 sm:$0xff]  }
  0x4d   :  { %1490 = vmatpush2.bf16.msra.mxu0 %v3665_v52  ;;  %v4281_v35 = vld [vmem:[%s4452_s0 + $0x14] ss:$28 sps:$4 sm:$0xff]   ;;  %v3755_v52 = vld [vmem:[#allocation2 + $0xa8] ss:$16 sps:$4 sm:$0xff]  }
  0x4e   :  { %1533 = vmatpush2.bf16.msra.mxu1 %v3666_v53  ;;  %1491 = vmatprep.subr.bf16.mxu0 %v3667_v54  ;;  %v3741_v38 = vld [vmem:[#allocation2 + $0x5e4] ss:$16 sps:$4 sm:$0xff]   ;;  %v3739_v40 = vld [vmem:[#allocation2 + $0x5e0] ss:$16 sps:$4 sm:$0xff]   ;;  %v3763_v54 = vld [vmem:[#allocation2 + $0x8c] ss:$16 sps:$4 sm:$0xff]  }
  0x4f   :  { %1534 = vmatprep.subr.bf16.mxu1 %v3669_v55  ;;  %v3742_v41 = vld [vmem:[%s4452_s0 + $0x18] ss:$28 sps:$4 sm:$0xff]   ;;  %v3746_v45 = vld [vmem:[#allocation2 + $0x5c0] ss:$16 sps:$4 sm:$0xff]  }
  0x50   :  { %v3748_v43 = vld [vmem:[#allocation2 + $0x5c4] ss:$16 sps:$4 sm:$0xff]   ;;  %v3752_v50 = vld [vmem:[#allocation2 + $0x5a0] ss:$16 sps:$4 sm:$0xff]  }
  0x51   :  { %1492 = vmatpush2.bf16.msra.mxu0 %v3671_v56  ;;  %v3754_v47 = vld [vmem:[#allocation2 + $0x5a4] ss:$16 sps:$4 sm:$0xff]   ;;  %v3758_v55 = vld [vmem:[#allocation2 + $0x580] ss:$16 sps:$4 sm:$0xff]   ;;  %v3761_v56 = vld [vmem:[#allocation2 + $0x88] ss:$16 sps:$4 sm:$0xff]  }
  0x52   :  { %1535 = vmatpush2.bf16.msra.mxu1 %v3672_v57  ;;  %1493 = vmatprep.subr.bf16.mxu0 %v3673_v58  ;;  %v3760_v53 = vld [vmem:[#allocation2 + $0x584] ss:$16 sps:$4 sm:$0xff]   ;;  %v3769_v58 = vld [vmem:[#allocation2 + $0x6c] ss:$16 sps:$4 sm:$0xff]  }
  0x53   :  { %1536 = vmatprep.subr.bf16.mxu1 %v3675_v59  ;;  %v3766_v57 = vld [vmem:[#allocation2 + $0x564] ss:$16 sps:$4 sm:$0xff]   ;;  %v3764_v59 = vld [vmem:[#allocation2 + $0x560] ss:$16 sps:$4 sm:$0xff]  }
  0x55   :  { %1494 = vmatpush2.bf16.msra.mxu0 %v3677_v60  ;;  %v3772_v60 = vld [vmem:[#allocation2 + $0x544] ss:$16 sps:$4 sm:$0xff]  }
  0x56   :  { %1537 = vmatpush2.bf16.msra.mxu1 %v3678_v61  ;;  %1495 = vmatprep.subr.bf16.mxu0 %v3679_v62  ;;  %v3775_v61 = vld [vmem:[#allocation2 + $0x4c] ss:$16 sps:$4 sm:$0xff]   ;;  %v3770_v62 = vld [vmem:[#allocation2 + $0x540] ss:$16 sps:$4 sm:$0xff]  }
  0x57   :  { %1538 = vmatprep.subr.bf16.mxu1 %v3681_v63  ;;  %v3773_v63 = vld [vmem:[#allocation2 + $0x48] ss:$16 sps:$4 sm:$0xff]  }
  0x59   :  { %1496 = vmatpush2.bf16.msra.mxu0 %v3683_v0  ;;  %v3778_v0 = vld [vmem:[#allocation2 + $0x524] ss:$16 sps:$4 sm:$0xff]  }
  0x5a   :  { %1539 = vmatpush2.bf16.msra.mxu1 %v3684_v1  ;;  %1551 = vmatprep.subr.bf16.mxu0 %v3693_v2  ;;  %v3781_v1 = vld [vmem:[#allocation2 + $0x2c] ss:$16 sps:$4 sm:$0xff]   ;;  %v3776_v2 = vld [vmem:[#allocation2 + $0x520] ss:$16 sps:$4 sm:$0xff]  }
  0x5b   :  { %1594 = vmatprep.subr.bf16.mxu1 %v3696_v3  ;;  %v3779_v3 = vld [vmem:[#allocation2 + $0x28] ss:$16 sps:$4 sm:$0xff]  }
  0x5c   :  { %1498 = vmatmul.mubr.bf16.vlgmr.msra.gmra.mxu0 %v4271_v4 }
  0x5d   :  { %1541 = vmatmul.mubr.bf16.vlgmr.msra.gmra.mxu1 %v3688_v5  ;;  %1552 = vmatpush1.bf16.msra.mxu0 %v3691_v6  ;;  %v3784_v5 = vld [vmem:[#allocation2 + $0x504] ss:$16 sps:$4 sm:$0xff]   ;;  %v3787_v6 = vld [vmem:[#allocation2 + $0xc] ss:$16 sps:$4 sm:$0xff]  }
  0x5e   :  { %1595 = vmatpush1.bf16.msra.mxu1 %v3694_v7  ;;  %1553 = vmatprep.subr.bf16.mxu0 %v3699_v8  ;;  %v3782_v7 = vld [vmem:[#allocation2 + $0x500] ss:$16 sps:$4 sm:$0xff]   ;;  %v3785_v8 = vld [vmem:[#allocation2 + $0x8] ss:$16 sps:$4 sm:$0xff]  }
  0x5f   :  { %1596 = vmatprep.subr.bf16.mxu1 %v3702_v9  ;;  %1626 = vmatprep.mubr.bf16.mxu1 %v4209_v14  ;;  %v3793_v9 = vld [vmem:[#allocation2 + $0x1ec] ss:$16 sps:$4 sm:$0xff]  }
  0x60   :  { %1583 = vmatprep.mubr.bf16.mxu0 %v4281_v35 }
  0x61   :  { %1554 = vmatpush1.bf16.msra.mxu0 %v3697_v10  ;;  %v3796_v10 = vld [vmem:[#allocation2 + $0x2ec] ss:$16 sps:$4 sm:$0xff]  }
  0x62   :  { %1597 = vmatpush1.bf16.msra.mxu1 %v3700_v11  ;;  %1555 = vmatprep.subr.bf16.mxu0 %v3705_v12  ;;  %v4291_v11 = vld [vmem:[%s4452_s0 + $0x10] ss:$28 sps:$4 sm:$0xff]   ;;  %v3791_v12 = vld [vmem:[#allocation2 + $0x1e8] ss:$16 sps:$4 sm:$0xff]  }
  0x63   :  { %1598 = vmatprep.subr.bf16.mxu1 %v3708_v13  ;;  %v3794_v13 = vld [vmem:[#allocation2 + $0x2e8] ss:$16 sps:$4 sm:$0xff]  }
  0x65   :  { %1556 = vmatpush1.bf16.msra.mxu0 %v3703_v15  ;;  %v3799_v15 = vld [vmem:[#allocation2 + $0x1cc] ss:$16 sps:$4 sm:$0xff]  }
  0x66   :  { %1599 = vmatpush1.bf16.msra.mxu1 %v3706_v16  ;;  %1557 = vmatprep.subr.bf16.mxu0 %v3711_v17  ;;  %v3802_v16 = vld [vmem:[#allocation2 + $0x2cc] ss:$16 sps:$4 sm:$0xff]   ;;  %v3797_v17 = vld [vmem:[#allocation2 + $0x1c8] ss:$16 sps:$4 sm:$0xff]  }
  0x67   :  { %1600 = vmatprep.subr.bf16.mxu1 %v3714_v18  ;;  %v3800_v18 = vld [vmem:[#allocation2 + $0x2c8] ss:$16 sps:$4 sm:$0xff]  }
  0x69   :  { %1558 = vmatpush1.bf16.msra.mxu0 %v3709_v19  ;;  %v3805_v19 = vld [vmem:[#allocation2 + $0x1ac] ss:$16 sps:$4 sm:$0xff]  }
  0x6a   :  { %1601 = vmatpush1.bf16.msra.mxu1 %v3712_v20  ;;  %1559 = vmatprep.subr.bf16.mxu0 %v3717_v21  ;;  %v3808_v20 = vld [vmem:[#allocation2 + $0x2ac] ss:$16 sps:$4 sm:$0xff]   ;;  %v3803_v21 = vld [vmem:[#allocation2 + $0x1a8] ss:$16 sps:$4 sm:$0xff]  }
  0x6b   :  { %1602 = vmatprep.subr.bf16.mxu1 %v3720_v22  ;;  %v3806_v22 = vld [vmem:[#allocation2 + $0x2a8] ss:$16 sps:$4 sm:$0xff]  }
  0x6d   :  { %1560 = vmatpush1.bf16.msra.mxu0 %v3715_v23  ;;  %v3811_v23 = vld [vmem:[#allocation2 + $0x18c] ss:$16 sps:$4 sm:$0xff]  }
  0x6e   :  { %1603 = vmatpush1.bf16.msra.mxu1 %v3718_v24  ;;  %1561 = vmatprep.subr.bf16.mxu0 %v3723_v25  ;;  %v3814_v24 = vld [vmem:[#allocation2 + $0x28c] ss:$16 sps:$4 sm:$0xff]   ;;  %v3809_v25 = vld [vmem:[#allocation2 + $0x188] ss:$16 sps:$4 sm:$0xff]  }
  0x6f   :  { %1604 = vmatprep.subr.bf16.mxu1 %v3726_v26  ;;  %v3812_v26 = vld [vmem:[#allocation2 + $0x288] ss:$16 sps:$4 sm:$0xff]  }
  0x71   :  { %1562 = vmatpush1.bf16.msra.mxu0 %v3721_v27  ;;  %v3817_v27 = vld [vmem:[#allocation2 + $0x16c] ss:$16 sps:$4 sm:$0xff]  }
  0x72   :  { %1605 = vmatpush1.bf16.msra.mxu1 %v3724_v28  ;;  %1563 = vmatprep.subr.bf16.mxu0 %v3729_v29  ;;  %v3820_v28 = vld [vmem:[#allocation2 + $0x26c] ss:$16 sps:$4 sm:$0xff]   ;;  %v3815_v29 = vld [vmem:[#allocation2 + $0x168] ss:$16 sps:$4 sm:$0xff]  }
  0x73   :  { %1606 = vmatprep.subr.bf16.mxu1 %v3732_v30  ;;  %v3823_v30 = vld [vmem:[#allocation2 + $0x14c] ss:$16 sps:$4 sm:$0xff]  }
  0x75   :  { %1564 = vmatpush1.bf16.msra.mxu0 %v3727_v31  ;;  %v3826_v31 = vld [vmem:[#allocation2 + $0x24c] ss:$16 sps:$4 sm:$0xff]  }
  0x76   :  { %1607 = vmatpush1.bf16.msra.mxu1 %v3730_v32  ;;  %1565 = vmatprep.subr.bf16.mxu0 %v3735_v33  ;;  %v3821_v32 = vld [vmem:[#allocation2 + $0x148] ss:$16 sps:$4 sm:$0xff]  }
  0x77   :  { %1608 = vmatprep.subr.bf16.mxu1 %v3738_v34  ;;  %v3824_v33 = vld [vmem:[#allocation2 + $0x248] ss:$16 sps:$4 sm:$0xff]   ;;  %v3829_v34 = vld [vmem:[#allocation2 + $0x12c] ss:$16 sps:$4 sm:$0xff]  }
  0x79   :  { %1566 = vmatpush1.bf16.msra.mxu0 %v3733_v36  ;;  %v3832_v36 = vld [vmem:[#allocation2 + $0x22c] ss:$16 sps:$4 sm:$0xff]  }
  0x7a   :  { %1609 = vmatpush1.bf16.msra.mxu1 %v3736_v37  ;;  %1567 = vmatprep.subr.bf16.mxu0 %v3741_v38  ;;  %v3827_v37 = vld [vmem:[#allocation2 + $0x128] ss:$16 sps:$4 sm:$0xff]  }
  0x7b   :  { %1637 = vmatprep.subr.bf16.mxu1 %v3745_v39  ;;  %v3830_v38 = vld [vmem:[#allocation2 + $0x228] ss:$16 sps:$4 sm:$0xff]   ;;  %v3835_v39 = vld [vmem:[#allocation2 + $0x10c] ss:$16 sps:$4 sm:$0xff]  }
  0x7d   :  { %1627 = vmatmul.mubr.bf16.vlgmr.msra.gmra.mxu1 %v3742_v41  ;;  %1568 = vmatpush2.bf16.msra.mxu0 %v3739_v40  ;;  %v3838_v40 = vld [vmem:[#allocation2 + $0x20c] ss:$16 sps:$4 sm:$0xff]   ;;  %v3833_v41 = vld [vmem:[#allocation2 + $0x108] ss:$16 sps:$4 sm:$0xff]  }
  0x7e   :  { %1638 = vmatpush1.bf16.msra.mxu1 %v3743_v42  ;;  %1569 = vmatprep.subr.bf16.mxu0 %v3748_v43  ;;  %v3836_v42 = vld [vmem:[#allocation2 + $0x208] ss:$16 sps:$4 sm:$0xff]   ;;  %v3841_v43 = vld [vmem:[#allocation2 + $0x3ec] ss:$16 sps:$4 sm:$0xff]  }
  0x7f   :  { %1639 = vmatprep.subr.bf16.mxu1 %v3751_v44  ;;  %1669 = vmatprep.mubr.bf16.mxu1 %v4259_v49  ;;  %v3767_v49 = vld [vmem:[#allocation2 + $0x68] ss:$16 sps:$4 sm:$0xff]   ;;  %v3844_v44 = vld [vmem:[#allocation2 + $0x4ec] ss:$16 sps:$4 sm:$0xff]  }
  0x81   :  { %1570 = vmatpush2.bf16.msra.mxu0 %v3746_v45  ;;  %v3839_v45 = vld [vmem:[#allocation2 + $0x3e8] ss:$16 sps:$4 sm:$0xff]  }
  0x82   :  { %1640 = vmatpush1.bf16.msra.mxu1 %v3749_v46  ;;  %1571 = vmatprep.subr.bf16.mxu0 %v3754_v47  ;;  %v3842_v46 = vld [vmem:[#allocation2 + $0x4e8] ss:$16 sps:$4 sm:$0xff]   ;;  %v3847_v47 = vld [vmem:[#allocation2 + $0x3cc] ss:$16 sps:$4 sm:$0xff]  }
  0x83   :  { %1641 = vmatprep.subr.bf16.mxu1 %v3757_v48  ;;  %v3850_v48 = vld [vmem:[#allocation2 + $0x4cc] ss:$16 sps:$4 sm:$0xff]  }
  0x85   :  { %1572 = vmatpush2.bf16.msra.mxu0 %v3752_v50  ;;  %v3845_v50 = vld [vmem:[#allocation2 + $0x3c8] ss:$16 sps:$4 sm:$0xff]  }
  0x86   :  { %1642 = vmatpush1.bf16.msra.mxu1 %v3755_v52  ;;  %1573 = vmatprep.subr.bf16.mxu0 %v3760_v53  ;;  %v3848_v52 = vld [vmem:[#allocation2 + $0x4c8] ss:$16 sps:$4 sm:$0xff]   ;;  %v3853_v53 = vld [vmem:[#allocation2 + $0x3ac] ss:$16 sps:$4 sm:$0xff]  }
  0x87   :  { %1643 = vmatprep.subr.bf16.mxu1 %v3763_v54  ;;  %v3856_v54 = vld [vmem:[#allocation2 + $0x4ac] ss:$16 sps:$4 sm:$0xff]  }
  0x89   :  { %1574 = vmatpush2.bf16.msra.mxu0 %v3758_v55  ;;  %v3851_v55 = vld [vmem:[#allocation2 + $0x3a8] ss:$16 sps:$4 sm:$0xff]  }
  0x8a   :  { %1644 = vmatpush1.bf16.msra.mxu1 %v3761_v56  ;;  %1575 = vmatprep.subr.bf16.mxu0 %v3766_v57  ;;  %v3854_v56 = vld [vmem:[#allocation2 + $0x4a8] ss:$16 sps:$4 sm:$0xff]   ;;  %v3859_v57 = vld [vmem:[#allocation2 + $0x38c] ss:$16 sps:$4 sm:$0xff]  }
  0x8b   :  { %1645 = vmatprep.subr.bf16.mxu1 %v3769_v58  ;;  %v3862_v58 = vld [vmem:[#allocation2 + $0x48c] ss:$16 sps:$4 sm:$0xff]  }
  0x8d   :  { %1576 = vmatpush2.bf16.msra.mxu0 %v3764_v59  ;;  %v3857_v59 = vld [vmem:[#allocation2 + $0x388] ss:$16 sps:$4 sm:$0xff]  }
  0x8e   :  { %1646 = vmatpush1.bf16.msra.mxu1 %v3767_v49  ;;  %1577 = vmatprep.subr.bf16.mxu0 %v3772_v60  ;;  %v3865_v49 = vld [vmem:[#allocation2 + $0x36c] ss:$16 sps:$4 sm:$0xff]  }
  0x8f   :  { %1647 = vmatprep.subr.bf16.mxu1 %v3775_v61  ;;  %v3868_v60 = vld [vmem:[#allocation2 + $0x46c] ss:$16 sps:$4 sm:$0xff]   ;;  %v3863_v61 = vld [vmem:[#allocation2 + $0x368] ss:$16 sps:$4 sm:$0xff]  }
  0x91   :  { %1578 = vmatpush2.bf16.msra.mxu0 %v3770_v62  ;;  %v3866_v62 = vld [vmem:[#allocation2 + $0x468] ss:$16 sps:$4 sm:$0xff]  }
  0x92   :  { %1648 = vmatpush1.bf16.msra.mxu1 %v3773_v63  ;;  %1579 = vmatprep.subr.bf16.mxu0 %v3778_v0  ;;  %v3871_v63 = vld [vmem:[#allocation2 + $0x34c] ss:$16 sps:$4 sm:$0xff]  }
  0x93   :  { %1649 = vmatprep.subr.bf16.mxu1 %v3781_v1  ;;  %v3874_v0 = vld [vmem:[#allocation2 + $0x44c] ss:$16 sps:$4 sm:$0xff]   ;;  %v3872_v1 = vld [vmem:[#allocation2 + $0x448] ss:$16 sps:$4 sm:$0xff]  }
  0x95   :  { %1580 = vmatpush2.bf16.msra.mxu0 %v3776_v2  ;;  %v3877_v2 = vld [vmem:[#allocation2 + $0x32c] ss:$16 sps:$4 sm:$0xff]  }
  0x96   :  { %1650 = vmatpush1.bf16.msra.mxu1 %v3779_v3  ;;  %1581 = vmatprep.subr.bf16.mxu0 %v3784_v5  ;;  %v3880_v3 = vld [vmem:[#allocation2 + $0x42c] ss:$16 sps:$4 sm:$0xff]   ;;  %v3875_v5 = vld [vmem:[#allocation2 + $0x328] ss:$16 sps:$4 sm:$0xff]  }
  0x97   :  { %1651 = vmatprep.subr.bf16.mxu1 %v3787_v6  ;;  %v3878_v6 = vld [vmem:[#allocation2 + $0x428] ss:$16 sps:$4 sm:$0xff]  }
  0x99   :  { %1582 = vmatpush2.bf16.msra.mxu0 %v3782_v7  ;;  %v3883_v7 = vld [vmem:[#allocation2 + $0x30c] ss:$16 sps:$4 sm:$0xff]  }
  0x9a   :  { %1652 = vmatpush1.bf16.msra.mxu1 %v3785_v8  ;;  %1680 = vmatprep.subr.bf16.mxu0 %v3796_v10  ;;  %v3886_v8 = vld [vmem:[#allocation2 + $0x40c] ss:$16 sps:$4 sm:$0xff]   ;;  %v3884_v10 = vld [vmem:[#allocation2 + $0x408] ss:$16 sps:$4 sm:$0xff]  }
  0x9b   :  { %1653 = vmatprep.subr.bf16.mxu1 %v3793_v9  ;;  %v3881_v9 = vld [vmem:[#allocation2 + $0x308] ss:$16 sps:$4 sm:$0xff]  }
  0x9c   :  { %1584 = vmatmul.mubr.bf16.vlgmr.msra.gmra.mxu0 %v4291_v11 }
  0x9d   :  { %1681 = vmatpush1.bf16.msra.mxu0 %v3794_v13  ;;  %1712 = vmatprep.mubr.bf16.mxu0 %v4264_v51  ;;  %v3818_v51 = vld [vmem:[#allocation2 + $0x268] ss:$16 sps:$4 sm:$0xff]   ;;  %v3892_v13 = vld [vmem:[#allocation2 + $0x6ec] ss:$16 sps:$4 sm:$0xff]  }
  0x9e   :  { %1654 = vmatpush2.bf16.msra.mxu1 %v3791_v12  ;;  %1682 = vmatprep.subr.bf16.mxu0 %v3802_v16  ;;  %v3889_v12 = vld [vmem:[#allocation2 + $0x5ec] ss:$16 sps:$4 sm:$0xff]   ;;  %v3890_v16 = vld [vmem:[#allocation2 + $0x6e8] ss:$16 sps:$4 sm:$0xff]  }
  0x9f   :  { %1655 = vmatprep.subr.bf16.mxu1 %v3799_v15  ;;  %v3887_v15 = vld [vmem:[#allocation2 + $0x5e8] ss:$16 sps:$4 sm:$0xff]  }
  0xa1   :  { %1683 = vmatpush1.bf16.msra.mxu0 %v3800_v18  ;;  %v3898_v18 = vld [vmem:[#allocation2 + $0x6cc] ss:$16 sps:$4 sm:$0xff]  }
  0xa2   :  { %1656 = vmatpush2.bf16.msra.mxu1 %v3797_v17  ;;  %1684 = vmatprep.subr.bf16.mxu0 %v3808_v20  ;;  %v3895_v17 = vld [vmem:[#allocation2 + $0x5cc] ss:$16 sps:$4 sm:$0xff]   ;;  %v3896_v20 = vld [vmem:[#allocation2 + $0x6c8] ss:$16 sps:$4 sm:$0xff]  }
  0xa3   :  { %1657 = vmatprep.subr.bf16.mxu1 %v3805_v19  ;;  %v3893_v19 = vld [vmem:[#allocation2 + $0x5c8] ss:$16 sps:$4 sm:$0xff]  }
  0xa5   :  { %1685 = vmatpush1.bf16.msra.mxu0 %v3806_v22  ;;  %v3901_v22 = vld [vmem:[#allocation2 + $0x5ac] ss:$16 sps:$4 sm:$0xff]  }
  0xa6   :  { %1658 = vmatpush2.bf16.msra.mxu1 %v3803_v21  ;;  %1686 = vmatprep.subr.bf16.mxu0 %v3814_v24  ;;  %v4159_v21 = vld [vmem:[%s4452_s0 + $0x8] ss:$28 sps:$4 sm:$0xff]  }
  0xa7   :  { %1659 = vmatprep.subr.bf16.mxu1 %v3811_v23  ;;  %v3904_v23 = vld [vmem:[#allocation2 + $0x6ac] ss:$16 sps:$4 sm:$0xff]   ;;  %v3899_v24 = vld [vmem:[#allocation2 + $0x5a8] ss:$16 sps:$4 sm:$0xff]  }
  0xa9   :  { %1687 = vmatpush1.bf16.msra.mxu0 %v3812_v26  ;;  %v3907_v26 = vld [vmem:[#allocation2 + $0x58c] ss:$16 sps:$4 sm:$0xff]  }
  0xaa   :  { %1660 = vmatpush2.bf16.msra.mxu1 %v3809_v25  ;;  %1688 = vmatprep.subr.bf16.mxu0 %v3820_v28  ;;  %v3902_v25 = vld [vmem:[#allocation2 + $0x6a8] ss:$16 sps:$4 sm:$0xff]  }
  0xab   :  { %1661 = vmatprep.subr.bf16.mxu1 %v3817_v27  ;;  %v3910_v27 = vld [vmem:[#allocation2 + $0x68c] ss:$16 sps:$4 sm:$0xff]   ;;  %v3905_v28 = vld [vmem:[#allocation2 + $0x588] ss:$16 sps:$4 sm:$0xff]  }
  0xad   :  { %1689 = vmatpush1.bf16.msra.mxu0 %v3818_v51  ;;  %v3913_v51 = vld [vmem:[#allocation2 + $0x56c] ss:$16 sps:$4 sm:$0xff]  }
  0xae   :  { %1662 = vmatpush2.bf16.msra.mxu1 %v3815_v29  ;;  %1690 = vmatprep.subr.bf16.mxu0 %v3826_v31  ;;  %v3908_v29 = vld [vmem:[#allocation2 + $0x688] ss:$16 sps:$4 sm:$0xff]  }
  0xaf   :  { %1663 = vmatprep.subr.bf16.mxu1 %v3823_v30  ;;  %v3916_v30 = vld [vmem:[#allocation2 + $0x66c] ss:$16 sps:$4 sm:$0xff]   ;;  %v3911_v31 = vld [vmem:[#allocation2 + $0x568] ss:$16 sps:$4 sm:$0xff]  }
  0xb1   :  { %1691 = vmatpush1.bf16.msra.mxu0 %v3824_v33  ;;  %v3919_v33 = vld [vmem:[#allocation2 + $0x54c] ss:$16 sps:$4 sm:$0xff]  }
  0xb2   :  { %1664 = vmatpush2.bf16.msra.mxu1 %v3821_v32  ;;  %1692 = vmatprep.subr.bf16.mxu0 %v3832_v36  ;;  %v3914_v32 = vld [vmem:[#allocation2 + $0x668] ss:$16 sps:$4 sm:$0xff]  }
  0xb3   :  { %1665 = vmatprep.subr.bf16.mxu1 %v3829_v34  ;;  %v3917_v34 = vld [vmem:[#allocation2 + $0x548] ss:$16 sps:$4 sm:$0xff]  }
  0xb4   :  { %v3920_v36 = vld [vmem:[#allocation2 + $0x648] ss:$16 sps:$4 sm:$0xff]  }
  0xb5   :  { %1693 = vmatpush1.bf16.msra.mxu0 %v3830_v38  ;;  %v3928_v38 = vld [vmem:[#allocation2 + $0x62c] ss:$16 sps:$4 sm:$0xff]  }
  0xb6   :  { %1666 = vmatpush2.bf16.msra.mxu1 %v3827_v37  ;;  %1694 = vmatprep.subr.bf16.mxu0 %v3838_v40  ;;  %v3925_v37 = vld [vmem:[#allocation2 + $0x52c] ss:$16 sps:$4 sm:$0xff]   ;;  %v3926_v40 = vld [vmem:[#allocation2 + $0x628] ss:$16 sps:$4 sm:$0xff]  }
  0xb7   :  { %1667 = vmatprep.subr.bf16.mxu1 %v3835_v39  ;;  %v3923_v39 = vld [vmem:[#allocation2 + $0x528] ss:$16 sps:$4 sm:$0xff]  }
  0xb9   :  { %1695 = vmatpush1.bf16.msra.mxu0 %v3836_v42  ;;  %v3934_v42 = vld [vmem:[#allocation2 + $0x60c] ss:$16 sps:$4 sm:$0xff]  }
  0xba   :  { %1668 = vmatpush2.bf16.msra.mxu1 %v3833_v41  ;;  %1696 = vmatprep.subr.bf16.mxu0 %v3841_v43  ;;  %v3931_v41 = vld [vmem:[#allocation2 + $0x50c] ss:$16 sps:$4 sm:$0xff]   ;;  %v3929_v43 = vld [vmem:[#allocation2 + $0x508] ss:$16 sps:$4 sm:$0xff]  }
  0xbb   :  { %1723 = vmatprep.subr.bf16.mxu1 %v3844_v44  ;;  %v3932_v44 = vld [vmem:[#allocation2 + $0x608] ss:$16 sps:$4 sm:$0xff]  }
  0xbd   :  { %1670 = vmatmul.mubr.bf16.vlgmr.msra.gmra.mxu1 %v4271_v4  ;;  %1697 = vmatpush2.bf16.msra.mxu0 %v3839_v45  ;;  %v3860_v4 = vld [vmem:[#allocation2 + $0x488] ss:$16 sps:$4 sm:$0xff]   ;;  %v3937_v45 = vld [vmem:[#allocation4 + $0xe4] ss:$16 sps:$4 sm:$0xff]  }
  0xbe   :  { %1724 = vmatpush1.bf16.msra.mxu1 %v3842_v46  ;;  %1698 = vmatprep.subr.bf16.mxu0 %v3847_v47  ;;  %v3935_v46 = vld [vmem:[#allocation4 + $0xe0] ss:$16 sps:$4 sm:$0xff]   ;;  %v3940_v47 = vld [vmem:[#allocation4 + $0xc4] ss:$16 sps:$4 sm:$0xff]  }
  0xbf   :  { %1725 = vmatprep.subr.bf16.mxu1 %v3850_v48  ;;  %1755 = vmatprep.mubr.bf16.mxu1 %v4281_v35  ;;  %v3869_v35 = vld [vmem:[#allocation2 + $0x348] ss:$16 sps:$4 sm:$0xff]  }
  0xc0   :  { %v4160_v48 = vld [vmem:[%s4452_s0 + $0x18] ss:$28 sps:$4 sm:$0xff]  }
  0xc1   :  { %1699 = vmatpush2.bf16.msra.mxu0 %v3845_v50  ;;  %v3938_v50 = vld [vmem:[#allocation4 + $0xc0] ss:$16 sps:$4 sm:$0xff]  }
  0xc2   :  { %1726 = vmatpush1.bf16.msra.mxu1 %v3848_v52  ;;  %1700 = vmatprep.subr.bf16.mxu0 %v3853_v53  ;;  %v3943_v52 = vld [vmem:[#allocation4 + $0xa4] ss:$16 sps:$4 sm:$0xff]   ;;  %v3941_v53 = vld [vmem:[#allocation4 + $0xa0] ss:$16 sps:$4 sm:$0xff]  }
  0xc3   :  { %1727 = vmatprep.subr.bf16.mxu1 %v3856_v54  ;;  %v3946_v54 = vld [vmem:[#allocation4 + $0x84] ss:$16 sps:$4 sm:$0xff]  }
  0xc5   :  { %1701 = vmatpush2.bf16.msra.mxu0 %v3851_v55  ;;  %v3944_v55 = vld [vmem:[#allocation4 + $0x80] ss:$16 sps:$4 sm:$0xff]  }
  0xc6   :  { %1728 = vmatpush1.bf16.msra.mxu1 %v3854_v56  ;;  %1702 = vmatprep.subr.bf16.mxu0 %v3859_v57  ;;  %v3949_v56 = vld [vmem:[#allocation4 + $0x64] ss:$16 sps:$4 sm:$0xff]   ;;  %v3947_v57 = vld [vmem:[#allocation4 + $0x60] ss:$16 sps:$4 sm:$0xff]  }
  0xc7   :  { %1729 = vmatprep.subr.bf16.mxu1 %v3862_v58  ;;  %v4009_v58 = vld [vmem:[#allocation4 + $0x2e4] ss:$16 sps:$4 sm:$0xff]  }
  0xc9   :  { %1703 = vmatpush2.bf16.msra.mxu0 %v3857_v59  ;;  %v3952_v59 = vld [vmem:[#allocation4 + $0x44] ss:$16 sps:$4 sm:$0xff]  }
  0xca   :  { %1730 = vmatpush1.bf16.msra.mxu1 %v3860_v4  ;;  %1704 = vmatprep.subr.bf16.mxu0 %v3865_v49  ;;  %v3950_v4 = vld [vmem:[#allocation4 + $0x40] ss:$16 sps:$4 sm:$0xff]  }
  0xcb   :  { %1731 = vmatprep.subr.bf16.mxu1 %v3868_v60  ;;  %v4013_v49 = vld [vmem:[#allocation4 + $0x2c0] ss:$16 sps:$4 sm:$0xff]   ;;  %v4015_v60 = vld [vmem:[#allocation4 + $0x2c4] ss:$16 sps:$4 sm:$0xff]  }
  0xcd   :  { %1705 = vmatpush2.bf16.msra.mxu0 %v3863_v61  ;;  %v3955_v61 = vld [vmem:[#allocation4 + $0x24] ss:$16 sps:$4 sm:$0xff]  }
  0xce   :  { %1732 = vmatpush1.bf16.msra.mxu1 %v3866_v62  ;;  %1706 = vmatprep.subr.bf16.mxu0 %v3871_v63  ;;  %v3953_v62 = vld [vmem:[#allocation4 + $0x20] ss:$16 sps:$4 sm:$0xff]  }
  0xcf   :  { %1733 = vmatprep.subr.bf16.mxu1 %v3874_v0  ;;  %v4019_v63 = vld [vmem:[#allocation4 + $0x2a0] ss:$16 sps:$4 sm:$0xff]   ;;  %v4021_v0 = vld [vmem:[#allocation4 + $0x2a4] ss:$16 sps:$4 sm:$0xff]  }
  0xd1   :  { %1707 = vmatpush2.bf16.msra.mxu0 %v3869_v35  ;;  %v3958_v35 = vld [vmem:[#allocation4 + $0x4] ss:$16 sps:$4 sm:$0xff]  }
  0xd2   :  { %1734 = vmatpush1.bf16.msra.mxu1 %v3872_v1  ;;  %1708 = vmatprep.subr.bf16.mxu0 %v3877_v2  ;;  %v3956_v1 = vld [vmem:[#allocation4] ss:$16 sps:$4 sm:$0xff]  }
  0xd3   :  { %1735 = vmatprep.subr.bf16.mxu1 %v3880_v3  ;;  %v4025_v2 = vld [vmem:[#allocation4 + $0x280] ss:$16 sps:$4 sm:$0xff]   ;;  %v4027_v3 = vld [vmem:[#allocation4 + $0x284] ss:$16 sps:$4 sm:$0xff]  }
  0xd5   :  { %1709 = vmatpush2.bf16.msra.mxu0 %v3875_v5  ;;  %v3961_v5 = vld [vmem:[#allocation4 + $0x1e4] ss:$16 sps:$4 sm:$0xff]  }
  0xd6   :  { %1736 = vmatpush1.bf16.msra.mxu1 %v3878_v6  ;;  %1710 = vmatprep.subr.bf16.mxu0 %v3883_v7  ;;  %v3959_v6 = vld [vmem:[#allocation4 + $0x1e0] ss:$16 sps:$4 sm:$0xff]  }
  0xd7   :  { %1737 = vmatprep.subr.bf16.mxu1 %v3886_v8  ;;  %v4031_v7 = vld [vmem:[#allocation4 + $0x260] ss:$16 sps:$4 sm:$0xff]   ;;  %v4033_v8 = vld [vmem:[#allocation4 + $0x264] ss:$16 sps:$4 sm:$0xff]  }
  0xd9   :  { %1711 = vmatpush2.bf16.msra.mxu0 %v3881_v9  ;;  %v3964_v9 = vld [vmem:[#allocation4 + $0x1c4] ss:$16 sps:$4 sm:$0xff]  }
  0xda   :  { %1738 = vmatpush1.bf16.msra.mxu1 %v3884_v10  ;;  %1766 = vmatprep.subr.bf16.mxu0 %v3892_v13  ;;  %v3962_v10 = vld [vmem:[#allocation4 + $0x1c0] ss:$16 sps:$4 sm:$0xff]   ;;  %v4039_v13 = vld [vmem:[#allocation4 + $0x244] ss:$16 sps:$4 sm:$0xff]  }
  0xdb   :  { %1739 = vmatprep.subr.bf16.mxu1 %v3889_v12  ;;  %v3967_v12 = vld [vmem:[#allocation4 + $0x1a4] ss:$16 sps:$4 sm:$0xff]  }
  0xdc   :  { %1713 = vmatmul.mubr.bf16.vlgmr.msra.gmra.mxu0 %v4159_v21  ;;  %v4049_v21 = vld [vmem:[#allocation4 + $0x200] ss:$16 sps:$4 sm:$0xff]  }
  0xdd   :  { %1767 = vmatpush1.bf16.msra.mxu0 %v3890_v16  ;;  %1798 = vmatprep.mubr.bf16.mxu0 %v4209_v14  ;;  %v3922_v14 = vld [vmem:[#allocation2 + $0x64c] ss:$16 sps:$4 sm:$0xff]   ;;  %v3965_v16 = vld [vmem:[#allocation4 + $0x1a0] ss:$16 sps:$4 sm:$0xff]  }
  0xde   :  { %1740 = vmatpush2.bf16.msra.mxu1 %v3887_v15  ;;  %1768 = vmatprep.subr.bf16.mxu0 %v3898_v18  ;;  %v4037_v15 = vld [vmem:[#allocation4 + $0x240] ss:$16 sps:$4 sm:$0xff]   ;;  %v4045_v18 = vld [vmem:[#allocation4 + $0x224] ss:$16 sps:$4 sm:$0xff]  }
  0xdf   :  { %1741 = vmatprep.subr.bf16.mxu1 %v3895_v17  ;;  %v3970_v17 = vld [vmem:[#allocation4 + $0x184] ss:$16 sps:$4 sm:$0xff]  }
  0xe1   :  { %1769 = vmatpush1.bf16.msra.mxu0 %v3896_v20  ;;  %v3968_v20 = vld [vmem:[#allocation4 + $0x180] ss:$16 sps:$4 sm:$0xff]  }
  0xe2   :  { %1742 = vmatpush2.bf16.msra.mxu1 %v3893_v19  ;;  %1770 = vmatprep.subr.bf16.mxu0 %v3904_v23  ;;  %v4043_v19 = vld [vmem:[#allocation4 + $0x220] ss:$16 sps:$4 sm:$0xff]   ;;  %v3973_v23 = vld [vmem:[#allocation4 + $0x164] ss:$16 sps:$4 sm:$0xff]  }
  0xe3   :  { %1743 = vmatprep.subr.bf16.mxu1 %v3901_v22  ;;  %v4051_v22 = vld [vmem:[#allocation4 + $0x204] ss:$16 sps:$4 sm:$0xff]  }
  0xe5   :  { %1771 = vmatpush1.bf16.msra.mxu0 %v3902_v25  ;;  %v4055_v25 = vld [vmem:[#allocation4 + $0x3e0] ss:$16 sps:$4 sm:$0xff]  }
  0xe6   :  { %1744 = vmatpush2.bf16.msra.mxu1 %v3899_v24  ;;  %1772 = vmatprep.subr.bf16.mxu0 %v3910_v27  ;;  %v3971_v24 = vld [vmem:[#allocation4 + $0x160] ss:$16 sps:$4 sm:$0xff]   ;;  %v3976_v27 = vld [vmem:[#allocation4 + $0x144] ss:$16 sps:$4 sm:$0xff]  }
  0xe7   :  { %1745 = vmatprep.subr.bf16.mxu1 %v3907_v26  ;;  %v4057_v26 = vld [vmem:[#allocation4 + $0x3e4] ss:$16 sps:$4 sm:$0xff]  }
  0xe9   :  { %1773 = vmatpush1.bf16.msra.mxu0 %v3908_v29  ;;  %v3974_v29 = vld [vmem:[#allocation4 + $0x140] ss:$16 sps:$4 sm:$0xff]  }
  0xea   :  { %1746 = vmatpush2.bf16.msra.mxu1 %v3905_v28  ;;  %1774 = vmatprep.subr.bf16.mxu0 %v3916_v30  ;;  %v4060_v28 = vld [vmem:[#allocation4 + $0x3c4] ss:$16 sps:$4 sm:$0xff]  }
  0xeb   :  { %1747 = vmatprep.subr.bf16.mxu1 %v3913_v51  ;;  %v4058_v51 = vld [vmem:[#allocation4 + $0x3c0] ss:$16 sps:$4 sm:$0xff]   ;;  %v3979_v30 = vld [vmem:[#allocation4 + $0x124] ss:$16 sps:$4 sm:$0xff]  }
  0xed   :  { %1775 = vmatpush1.bf16.msra.mxu0 %v3914_v32  ;;  %v3977_v32 = vld [vmem:[#allocation4 + $0x120] ss:$16 sps:$4 sm:$0xff]  }
  0xee   :  { %1748 = vmatpush2.bf16.msra.mxu1 %v3911_v31  ;;  %1776 = vmatprep.subr.bf16.mxu0 %v3922_v14  ;;  %v4063_v31 = vld [vmem:[#allocation4 + $0x3a4] ss:$16 sps:$4 sm:$0xff]  }
  0xef   :  { %1749 = vmatprep.subr.bf16.mxu1 %v3919_v33  ;;  %v4061_v33 = vld [vmem:[#allocation4 + $0x3a0] ss:$16 sps:$4 sm:$0xff]   ;;  %v3982_v14 = vld [vmem:[#allocation4 + $0x104] ss:$16 sps:$4 sm:$0xff]  }
  0xf1   :  { %1777 = vmatpush1.bf16.msra.mxu0 %v3920_v36  ;;  %v3980_v36 = vld [vmem:[#allocation4 + $0x100] ss:$16 sps:$4 sm:$0xff]  }
  0xf2   :  { %1750 = vmatpush2.bf16.msra.mxu1 %v3917_v34  ;;  %1778 = vmatprep.subr.bf16.mxu0 %v3928_v38  ;;  %v4066_v34 = vld [vmem:[#allocation4 + $0x384] ss:$16 sps:$4 sm:$0xff]   ;;  %v3985_v38 = vld [vmem:[#allocation4 + $0xec] ss:$16 sps:$4 sm:$0xff]  }
  0xf3   :  { %1751 = vmatprep.subr.bf16.mxu1 %v3925_v37  ;;  %v4064_v37 = vld [vmem:[#allocation4 + $0x380] ss:$16 sps:$4 sm:$0xff]  }
  0xf5   :  { %1779 = vmatpush1.bf16.msra.mxu0 %v3926_v40  ;;  %v4067_v40 = vld [vmem:[#allocation4 + $0x360] ss:$16 sps:$4 sm:$0xff]  }
  0xf6   :  { %1752 = vmatpush2.bf16.msra.mxu1 %v3923_v39  ;;  %1780 = vmatprep.subr.bf16.mxu0 %v3934_v42  ;;  %v4069_v39 = vld [vmem:[#allocation4 + $0x364] ss:$16 sps:$4 sm:$0xff]   ;;  %v4070_v42 = vld [vmem:[#allocation4 + $0x340] ss:$16 sps:$4 sm:$0xff]  }
  0xf7   :  { %1753 = vmatprep.subr.bf16.mxu1 %v3931_v41  ;;  %v4072_v41 = vld [vmem:[#allocation4 + $0x344] ss:$16 sps:$4 sm:$0xff]  }
  0xf9   :  { %1781 = vmatpush1.bf16.msra.mxu0 %v3932_v44  ;;  %v4073_v44 = vld [vmem:[#allocation4 + $0x320] ss:$16 sps:$4 sm:$0xff]  }
  0xfa   :  { %1754 = vmatpush2.bf16.msra.mxu1 %v3929_v43  ;;  %2611 = vmatprep.subr.bf16.mxu0 %v3937_v45  ;;  %v4075_v43 = vld [vmem:[#allocation4 + $0x324] ss:$16 sps:$4 sm:$0xff]  }
  0xfb   :  { %2654 = vmatprep.subr.bf16.mxu1 %v4009_v58  ;;  %v4078_v45 = vld [vmem:[#allocation4 + $0x304] ss:$16 sps:$4 sm:$0xff]   ;;  %v4312_v58 = vld [vmem:[%s4454_s2] sm:$0xf] }
  0xfc   :  { %1799 = vmatmul.mubr.bf16.vlgmr.msra.gmra.mxu0 %v4160_v48 }
  0xfd   :  { %1756 = vmatmul.mubr.bf16.vlgmr.msra.gmra.mxu1 %v4291_v11  ;;  %2612 = vmatpush1.bf16.msra.mxu0 %v3935_v46  ;;  %v4007_v11 = vld [vmem:[#allocation4 + $0x2e0] ss:$16 sps:$4 sm:$0xff]  }
  0xfe   :  { %2613 = vmatprep.subr.bf16.mxu0 %v3940_v47  ;;  %2655 = vmatpush1.bf16.msra.mxu1 %v4007_v11  ;;  %v4076_v46 = vld [vmem:[#allocation4 + $0x300] ss:$16 sps:$4 sm:$0xff]   ;;  %v289_v47 = vlaneseq }
  0xff   :  { %2656 = vmatprep.subr.bf16.mxu1 %v4015_v60 }
 0x101   :  { %2614 = vmatpush1.bf16.msra.mxu0 %v3938_v50  ;;  %v4081_v50 = vld [vmem:[#allocation4 + $0x2ec] ss:$16 sps:$4 sm:$0xff]  }
 0x102   :  { %2615 = vmatprep.subr.bf16.mxu0 %v3943_v52  ;;  %2657 = vmatpush1.bf16.msra.mxu1 %v4013_v49  ;;  %v4305_v52 = vshrl.u32 %v289_v47, 7  ;;  %v4016_v47 = vld [vmem:[#allocation4 + $0x1c8] ss:$16 sps:$4 sm:$0xff]  }
 0x103   :  { %2658 = vmatprep.subr.bf16.mxu1 %v4021_v0 }
 0x105   :  { %2616 = vmatpush1.bf16.msra.mxu0 %v3941_v53 }
 0x106   :  { %2617 = vmatprep.subr.bf16.mxu0 %v3946_v54  ;;  %2659 = vmatpush1.bf16.msra.mxu1 %v4019_v63 }
 0x107   :  { %2660 = vmatprep.subr.bf16.mxu1 %v4027_v3 }
 0x109   :  { %2618 = vmatpush1.bf16.msra.mxu0 %v3944_v55  ;;  %v295_v55 = vsub.s32 1, %v4305_v52 }
 0x10a   :  { %2619 = vmatprep.subr.bf16.mxu0 %v3949_v56  ;;  %2661 = vmatpush1.bf16.msra.mxu1 %v4025_v2  ;;  %v291_v56 = vsub.s32 0, %v4305_v52 }
 0x10b   :  { %2662 = vmatprep.subr.bf16.mxu1 %v4033_v8 }
 0x10d   :  { %2620 = vmatpush1.bf16.msra.mxu0 %v3947_v57 }
 0x10e   :  { %2621 = vmatprep.subr.bf16.mxu0 %v3952_v59  ;;  %2663 = vmatpush1.bf16.msra.mxu1 %v4031_v7  ;;  %v296_v59 = vrot.slane %v4312_v58, %v295_v55 }
 0x10f   :  { %2664 = vmatprep.subr.bf16.mxu1 %v4039_v13 }
 0x111   :  { %2622 = vmatpush1.bf16.msra.mxu0 %v3950_v4  ;;  %v292_v4 = vrot.slane %v4312_v58, %v291_v56 }
 0x112   :  { %2623 = vmatprep.subr.bf16.mxu0 %v3955_v61  ;;  %2665 = vmatpush1.bf16.msra.mxu1 %v4037_v15 }
 0x113   :  { %2666 = vmatprep.subr.bf16.mxu1 %v4045_v18 }
 0x115   :  { %2624 = vmatpush1.bf16.msra.mxu0 %v3953_v62 }
 0x116   :  { %2625 = vmatprep.subr.bf16.mxu0 %v3958_v35  ;;  %2667 = vmatpush1.bf16.msra.mxu1 %v4043_v19 }
 0x117   :  { %2668 = vmatprep.subr.bf16.mxu1 %v4051_v22 }
 0x119   :  { %2626 = vmatpush1.bf16.msra.mxu0 %v3956_v1 }
 0x11a   :  { %2627 = vmatprep.subr.bf16.mxu0 %v3961_v5  ;;  %2669 = vmatpush1.bf16.msra.mxu1 %v4049_v21 }
 0x11b   :  { %2670 = vmatprep.subr.bf16.mxu1 %v4057_v26 }
 0x11c   :  { %v1499_v53 = vpop.f32.mrf.mxu0 }
 0x11d   :  { %2628 = vmatpush2.bf16.msra.mxu0 %v3959_v6  ;;  %v1542_v48 = vpop.f32.mrf.mxu1  ;;  %v1500_v63 = vadd.f32 %v1499_v53, %v292_v4  ;;  %v4030_v53 = vld [vmem:[#allocation4 + $0x18c] ss:$16 sps:$4 sm:$0xff]  }
 0x11e   :  { %2629 = vmatprep.subr.bf16.mxu0 %v3964_v9  ;;  %2671 = vmatpush2.bf16.msra.mxu1 %v4055_v25  ;;  %v1501_v57 = vpop.f32.mrf.mxu0 }
 0x11f   :  { %2672 = vmatprep.subr.bf16.mxu1 %v4060_v28  ;;  %v1544_v54 = vpop.f32.mrf.mxu1  ;;  %v1502_v62 = vadd.f32 %v1501_v57, %v296_v59  ;;  %v1543_v6 = vadd.f32 %v1542_v48, %v1500_v63  ;;  %v4024_v48 = vld [vmem:[#allocation4 + $0x1ac] ss:$16 sps:$4 sm:$0xff]  }
 0x120   :  { %v1503_v49 = vpop.f32.mrf.mxu0  ;;  %v4036_v57 = vld [vmem:[#allocation4 + $0x16c] ss:$16 sps:$4 sm:$0xff]  }
 0x121   :  { %2630 = vmatpush2.bf16.msra.mxu0 %v3962_v10  ;;  %v1546_v11 = vpop.f32.mrf.mxu1  ;;  %v1504_v35 = vadd.f32 %v1503_v49, %v292_v4  ;;  %v1545_v3 = vadd.f32 %v1544_v54, %v1502_v62  ;;  %v4028_v54 = vld [vmem:[#allocation4 + $0x188] ss:$16 sps:$4 sm:$0xff]   ;;  %v4048_v49 = vld [vmem:[#allocation4 + $0x12c] ss:$16 sps:$4 sm:$0xff]  }
 0x122   :  { %2631 = vmatprep.subr.bf16.mxu0 %v3967_v12  ;;  %2673 = vmatpush2.bf16.msra.mxu1 %v4058_v51  ;;  %v1505_v0 = vpop.f32.mrf.mxu0  ;;  %v4040_v4 = vld [vmem:[#allocation4 + $0x148] ss:$16 sps:$4 sm:$0xff]  }
 0x123   :  { %2674 = vmatprep.subr.bf16.mxu1 %v4063_v31  ;;  %v1548_v60 = vpop.f32.mrf.mxu1  ;;  %v1506_v5 = vadd.f32 %v1505_v0, %v296_v59  ;;  %v1547_v8 = vadd.f32 %v1546_v11, %v1504_v35  ;;  %v3986_v31 = vld [vmem:[#allocation4 + $0xc8] ss:$16 sps:$4 sm:$0xff]   ;;  %v4042_v59 = vld [vmem:[#allocation4 + $0x14c] ss:$16 sps:$4 sm:$0xff]  }
 0x124   :  { %v4034_v11 = vld [vmem:[#allocation4 + $0x168] ss:$16 sps:$4 sm:$0xff]  }
 0x125   :  { %2632 = vmatpush2.bf16.msra.mxu0 %v3965_v16  ;;  %v1549_v15 = vadd.f32 %v1548_v60, %v1506_v5  ;;  %v4046_v60 = vld [vmem:[#allocation4 + $0x128] ss:$16 sps:$4 sm:$0xff]  }
 0x126   :  { %2633 = vmatprep.subr.bf16.mxu0 %v3970_v17  ;;  %2675 = vmatpush2.bf16.msra.mxu1 %v4061_v33  ;;  %v3989_v33 = vld [vmem:[#allocation4 + $0xa8] ss:$16 sps:$4 sm:$0xff]  }
 0x127   :  { %2676 = vmatprep.subr.bf16.mxu1 %v4066_v34  ;;  %v3992_v34 = vld [vmem:[#allocation4 + $0x88] ss:$16 sps:$4 sm:$0xff]  }
 0x128   :  { %v4052_v62 = vld [vmem:[#allocation4 + $0x108] ss:$16 sps:$4 sm:$0xff]  }
 0x129   :  { %2634 = vmatpush2.bf16.msra.mxu0 %v3968_v20 }
 0x12a   :  { %2635 = vmatprep.subr.bf16.mxu0 %v3973_v23  ;;  %2677 = vmatpush2.bf16.msra.mxu1 %v4064_v37  ;;  %v3995_v37 = vld [vmem:[#allocation4 + $0x68] ss:$16 sps:$4 sm:$0xff]  }
 0x12b   :  { %2678 = vmatprep.subr.bf16.mxu1 %v4069_v39  ;;  %v3998_v39 = vld [vmem:[#allocation4 + $0x48] ss:$16 sps:$4 sm:$0xff]  }
 0x12d   :  { %2636 = vmatpush2.bf16.msra.mxu0 %v3971_v24 }
 0x12e   :  { %2637 = vmatprep.subr.bf16.mxu0 %v3976_v27  ;;  %2679 = vmatpush2.bf16.msra.mxu1 %v4067_v40  ;;  %v4003_v40 = vld [vmem:[#allocation4 + $0x2c] ss:$16 sps:$4 sm:$0xff]  }
 0x12f   :  { %2680 = vmatprep.subr.bf16.mxu1 %v4072_v41  ;;  %v4001_v41 = vld [vmem:[#allocation4 + $0x28] ss:$16 sps:$4 sm:$0xff]  }
 0x131   :  { %2638 = vmatpush2.bf16.msra.mxu0 %v3974_v29  ;;  %v3983_v29 = vld [vmem:[#allocation4 + $0xe8] ss:$16 sps:$4 sm:$0xff]  }
 0x132   :  { %2639 = vmatprep.subr.bf16.mxu0 %v3979_v30  ;;  %2681 = vmatpush2.bf16.msra.mxu1 %v4070_v42  ;;  %v3988_v30 = vld [vmem:[#allocation4 + $0xcc] ss:$16 sps:$4 sm:$0xff]  }
 0x133   :  { %2682 = vmatprep.subr.bf16.mxu1 %v4075_v43  ;;  %v4006_v42 = vld [vmem:[#allocation4 + $0xc] ss:$16 sps:$4 sm:$0xff]   ;;  %v4004_v43 = vld [vmem:[#allocation4 + $0x8] ss:$16 sps:$4 sm:$0xff]  }
 0x135   :  { %2640 = vmatpush2.bf16.msra.mxu0 %v3977_v32  ;;  %v3991_v32 = vld [vmem:[#allocation4 + $0xac] ss:$16 sps:$4 sm:$0xff]  }
 0x136   :  { %2641 = vmatprep.subr.bf16.mxu0 %v3982_v14  ;;  %2683 = vmatpush2.bf16.msra.mxu1 %v4073_v44  ;;  %v3994_v14 = vld [vmem:[#allocation4 + $0x8c] ss:$16 sps:$4 sm:$0xff]  }
 0x137   :  { %2684 = vmatprep.subr.bf16.mxu1 %v4078_v45  ;;  %v4012_v44 = vld [vmem:[#allocation4 + $0x1ec] ss:$16 sps:$4 sm:$0xff]   ;;  %v4010_v45 = vld [vmem:[#allocation4 + $0x1e8] ss:$16 sps:$4 sm:$0xff]  }
 0x139   :  { %2642 = vmatpush2.bf16.msra.mxu0 %v3980_v36  ;;  %v3997_v36 = vld [vmem:[#allocation4 + $0x6c] ss:$16 sps:$4 sm:$0xff]  }
 0x13a   :  { %2697 = vmatprep.subr.bf16.mxu0 %v3985_v38  ;;  %2685 = vmatpush2.bf16.msra.mxu1 %v4076_v46  ;;  %v4000_v38 = vld [vmem:[#allocation4 + $0x4c] ss:$16 sps:$4 sm:$0xff]  }
 0x13b   :  { %2740 = vmatprep.subr.bf16.mxu1 %v4081_v50  ;;  %v4018_v46 = vld [vmem:[#allocation4 + $0x1cc] ss:$16 sps:$4 sm:$0xff]   ;;  %v4022_v50 = vld [vmem:[#allocation4 + $0x1a8] ss:$16 sps:$4 sm:$0xff]  }
 0x13d   :  { %v1628_v61 = vpop.f32.mrf.mxu1 }
 0x13f   :  { %v1630_v1 = vpop.f32.mrf.mxu1 }
 0x141   :  { %v1632_v10 = vpop.f32.mrf.mxu1 }
 0x143   :  { %v1634_v21 = vpop.f32.mrf.mxu1 }
 0x15c   :  { %v1585_v2 = vpop.f32.mrf.mxu0 }
 0x15d   :  { %v1586_v12 = vadd.f32 %v1585_v2, %v1543_v6  ;;  %v303_v2 = vsub.s32 3, %v4305_v52 }
 0x15e   :  { %v1587_v7 = vpop.f32.mrf.mxu0 }
 0x15f   :  { %v1588_v9 = vadd.f32 %v1587_v7, %v1545_v3  ;;  %v1629_v22 = vadd.f32 %v1628_v61, %v1586_v12  ;;  %v4054_v61 = vld [vmem:[#allocation4 + $0x10c] ss:$16 sps:$4 sm:$0xff]   ;;  %v299_v3 = vsub.s32 2, %v4305_v52  ;;  %v304_v7 = vrot.slane %v4312_v58, %v303_v2 }
 0x160   :  { %v1589_v13 = vpop.f32.mrf.mxu0 }
 0x161   :  { %v1590_v16 = vadd.f32 %v1589_v13, %v1547_v8  ;;  %v1631_v18 = vadd.f32 %v1630_v1, %v1588_v9  ;;  %v1809_v27 = vmax.f32 %v1629_v22, 0.0  ;;  %v300_v8 = vrot.slane %v4312_v58, %v299_v3 }
 0x162   :  { %v1591_v17 = vpop.f32.mrf.mxu0 }
 0x163   :  { %v1633_v19 = vadd.f32 %v1632_v10, %v1590_v16  ;;  %v1592_v20 = vadd.f32 %v1591_v17, %v1549_v15  ;;  %v1810_v25 = vmax.f32 %v1631_v18, 0.0 }
 0x165   :  { %v1635_v23 = vadd.f32 %v1634_v21, %v1592_v20  ;;  %v1813_v24 = vmax.f32 %v1633_v19, 0.0 }
 0x167   :  { %v1814_v26 = vmax.f32 %v1635_v23, 0.0  ;;  %v4320_v51 = vpack.c.bf16 %v1813_v24, %v1809_v27 }
 0x169   :  { %v1818_v28 = vpack.c.bf16 %v1814_v26, %v1810_v25 }
 0x16b   :  { %2643 = vmatprep.mubr.bf16.mxu0 %v1818_v28 }
 0x16c   :  { %2644 = vmatmul.mubr.bf16.vlgmr.msra.gmra.mxu0 %v4320_v51 }
 0x16d   :  { %2698 = vmatpush1.bf16.msra.mxu0 %v3983_v29  ;;  %2729 = vmatprep.mubr.bf16.mxu0 %v1818_v28 }
 0x16e   :  { %2699 = vmatprep.subr.bf16.mxu0 %v3988_v30 }
 0x171   :  { %2700 = vmatpush1.bf16.msra.mxu0 %v3986_v31 }
 0x172   :  { %2701 = vmatprep.subr.bf16.mxu0 %v3991_v32 }
 0x175   :  { %2702 = vmatpush1.bf16.msra.mxu0 %v3989_v33 }
 0x176   :  { %2703 = vmatprep.subr.bf16.mxu0 %v3994_v14 }
 0x179   :  { %2704 = vmatpush1.bf16.msra.mxu0 %v3992_v34 }
 0x17a   :  { %2705 = vmatprep.subr.bf16.mxu0 %v3997_v36 }
 0x17d   :  { %2706 = vmatpush1.bf16.msra.mxu0 %v3995_v37  ;;  %v1671_v63 = vpop.f32.mrf.mxu1 }
 0x17e   :  { %2707 = vmatprep.subr.bf16.mxu0 %v4000_v38  ;;  %v1672_v13 = vadd.f32 %v1671_v63, %v300_v8  ;;  %v4111_v63 = vld [vmem:[#allocation4 + $0x3ac] ss:$16 sps:$4 sm:$0xff]  }
 0x17f   :  { %v1673_v35 = vpop.f32.mrf.mxu1 }
 0x180   :  { %v1674_v12 = vadd.f32 %v1673_v35, %v304_v7  ;;  %v4114_v35 = vld [vmem:[#allocation4 + $0x38c] ss:$16 sps:$4 sm:$0xff]  }
 0x181   :  { %2708 = vmatpush1.bf16.msra.mxu0 %v3998_v39  ;;  %v1675_v5 = vpop.f32.mrf.mxu1 }
 0x182   :  { %2709 = vmatprep.subr.bf16.mxu0 %v4003_v40  ;;  %v1676_v17 = vadd.f32 %v1675_v5, %v300_v8  ;;  %v4079_v40 = vld [vmem:[#allocation4 + $0x2e8] ss:$16 sps:$4 sm:$0xff]   ;;  %v4117_v8 = vld [vmem:[#allocation4 + $0x36c] ss:$16 sps:$4 sm:$0xff]  }
 0x183   :  { %v1677_v9 = vpop.f32.mrf.mxu1  ;;  %v4128_v5 = vld [vmem:[%s4457_s5 + $0x38] sm:$0xff]  }
 0x184   :  { %v1678_v22 = vadd.f32 %v1677_v9, %v304_v7  ;;  %v4112_v7 = vld [vmem:[#allocation4 + $0x388] ss:$16 sps:$4 sm:$0xff]   ;;  %v4130_v9 = vld [vmem:[%s4457_s5 + $0x30] sm:$0xff]  }
 0x185   :  { %2710 = vmatpush1.bf16.msra.mxu0 %v4001_v41 }
 0x186   :  { %2711 = vmatprep.subr.bf16.mxu0 %v4006_v42  ;;  %v4084_v42 = vld [vmem:[#allocation4 + $0x2cc] ss:$16 sps:$4 sm:$0xff]  }
 0x189   :  { %2712 = vmatpush1.bf16.msra.mxu0 %v4004_v43  ;;  %v4082_v43 = vld [vmem:[#allocation4 + $0x2c8] ss:$16 sps:$4 sm:$0xff]  }
 0x18a   :  { %2713 = vmatprep.subr.bf16.mxu0 %v4012_v44  ;;  %v4087_v44 = vld [vmem:[#allocation4 + $0x2ac] ss:$16 sps:$4 sm:$0xff]  }
 0x18d   :  { %2714 = vmatpush2.bf16.msra.mxu0 %v4010_v45  ;;  %v4085_v45 = vld [vmem:[#allocation4 + $0x2a8] ss:$16 sps:$4 sm:$0xff]  }
 0x18e   :  { %2715 = vmatprep.subr.bf16.mxu0 %v4018_v46  ;;  %v4090_v46 = vld [vmem:[#allocation4 + $0x28c] ss:$16 sps:$4 sm:$0xff]  }
 0x191   :  { %2716 = vmatpush2.bf16.msra.mxu0 %v4016_v47  ;;  %v4088_v47 = vld [vmem:[#allocation4 + $0x288] ss:$16 sps:$4 sm:$0xff]  }
 0x192   :  { %2717 = vmatprep.subr.bf16.mxu0 %v4024_v48  ;;  %v4093_v48 = vld [vmem:[#allocation4 + $0x26c] ss:$16 sps:$4 sm:$0xff]  }
 0x195   :  { %2718 = vmatpush2.bf16.msra.mxu0 %v4022_v50  ;;  %v4091_v50 = vld [vmem:[#allocation4 + $0x268] ss:$16 sps:$4 sm:$0xff]  }
 0x196   :  { %2719 = vmatprep.subr.bf16.mxu0 %v4030_v53  ;;  %v4096_v53 = vld [vmem:[#allocation4 + $0x24c] ss:$16 sps:$4 sm:$0xff]  }
 0x199   :  { %2720 = vmatpush2.bf16.msra.mxu0 %v4028_v54  ;;  %v4094_v54 = vld [vmem:[#allocation4 + $0x248] ss:$16 sps:$4 sm:$0xff]  }
 0x19a   :  { %2721 = vmatprep.subr.bf16.mxu0 %v4036_v57  ;;  %v4099_v57 = vld [vmem:[#allocation4 + $0x22c] ss:$16 sps:$4 sm:$0xff]  }
 0x19c   :  { %v1714_v0 = vpop.f32.mrf.mxu0 }
 0x19d   :  { %2722 = vmatpush2.bf16.msra.mxu0 %v4034_v11  ;;  %v1715_v19 = vadd.f32 %v1714_v0, %v1672_v13  ;;  %v4097_v11 = vld [vmem:[#allocation4 + $0x228] ss:$16 sps:$4 sm:$0xff]   ;;  %v4120_v13 = vld [vmem:[#allocation4 + $0x34c] ss:$16 sps:$4 sm:$0xff]  }
 0x19e   :  { %2723 = vmatprep.subr.bf16.mxu0 %v4042_v59  ;;  %v1716_v1 = vpop.f32.mrf.mxu0  ;;  %v4102_v59 = vld [vmem:[#allocation4 + $0x20c] ss:$16 sps:$4 sm:$0xff]   ;;  %v4109_v0 = vld [vmem:[#allocation4 + $0x3a8] ss:$16 sps:$4 sm:$0xff]  }
 0x19f   :  { %v1717_v18 = vadd.f32 %v1716_v1, %v1674_v12  ;;  %v4127_v1 = vld [vmem:[%s4457_s5 + $0x78] sm:$0xff]  }
 0x1a0   :  { %v1718_v6 = vpop.f32.mrf.mxu0  ;;  %v4115_v12 = vld [vmem:[#allocation4 + $0x368] ss:$16 sps:$4 sm:$0xff]  }
 0x1a1   :  { %2724 = vmatpush2.bf16.msra.mxu0 %v4040_v4  ;;  %v1719_v23 = vadd.f32 %v1718_v6, %v1676_v17  ;;  %v4100_v4 = vld [vmem:[#allocation4 + $0x208] ss:$16 sps:$4 sm:$0xff]   ;;  %v4129_v6 = vld [vmem:[%s4457_s5 + $0x70] sm:$0xff]  }
 0x1a2   :  { %2725 = vmatprep.subr.bf16.mxu0 %v4048_v49  ;;  %v1720_v10 = vpop.f32.mrf.mxu0  ;;  %v4105_v49 = vld [vmem:[#allocation4 + $0x3ec] ss:$16 sps:$4 sm:$0xff]   ;;  %v4118_v17 = vld [vmem:[#allocation4 + $0x348] ss:$16 sps:$4 sm:$0xff]  }
 0x1a3   :  { %v1721_v28 = vadd.f32 %v1720_v10, %v1678_v22  ;;  %v4131_v10 = vld [vmem:[%s4457_s5 + $0x68] sm:$0xff]  }
 0x1a4   :  { %v4126_v22 = vld [vmem:[#allocation4 + $0x30c] ss:$16 sps:$4 sm:$0xff]  }
 0x1a5   :  { %2726 = vmatpush2.bf16.msra.mxu0 %v4046_v60  ;;  %v4103_v60 = vld [vmem:[#allocation4 + $0x3e8] ss:$16 sps:$4 sm:$0xff]  }
 0x1a6   :  { %2727 = vmatprep.subr.bf16.mxu0 %v4054_v61  ;;  %v4108_v61 = vld [vmem:[#allocation4 + $0x3cc] ss:$16 sps:$4 sm:$0xff]  }
 0x1a9   :  { %2728 = vmatpush2.bf16.msra.mxu0 %v4052_v62  ;;  %v4106_v62 = vld [vmem:[#allocation4 + $0x3c8] ss:$16 sps:$4 sm:$0xff]  }
 0x1aa   :  { %3540 = vmatprep.subr.bf16.mxu0 %v4127_v1 }
 0x1ac   :  { %2730 = vmatmul.mubr.bf16.vlgmr.msra.gmra.mxu0 %v4320_v51 }
 0x1ad   :  { %3541 = vmatpush3.bf16.msra.mxu0 %v4128_v5 }
 0x1ae   :  { %3542 = vmatprep.subr.bf16.mxu0 %v4129_v6 }
 0x1b1   :  { %3543 = vmatpush3.bf16.msra.mxu0 %v4130_v9 }
 0x1b2   :  { %3544 = vmatprep.subr.bf16.mxu0 %v4131_v10 }
 0x1bc   :  { %v1800_v16 = vpop.f32.mrf.mxu0 }
 0x1bd   :  { %v1757_v15 = vpop.f32.mrf.mxu1 }
 0x1be   :  { %v1802_v21 = vpop.f32.mrf.mxu0  ;;  %v1758_v25 = vadd.f32 %v1757_v15, %v1715_v19  ;;  %v4132_v15 = vld [vmem:[%s4457_s5 + $0x28] sm:$0xff]   ;;  %v4134_v19 = vld [vmem:[%s4457_s5 + $0x20] sm:$0xff]  }
 0x1bf   :  { %v1759_v20 = vpop.f32.mrf.mxu1  ;;  %3545 = vmatpush3.bf16.msra.mxu0 %v4132_v15 }
 0x1c0   :  { %v1760_v24 = vadd.f32 %v1759_v20, %v1717_v18  ;;  %v1804_v27 = vpop.f32.mrf.mxu0  ;;  %v1801_v32 = vadd.f32 %v1800_v16, %v1758_v25  ;;  %v4133_v16 = vld [vmem:[%s4457_s5 + $0x60] sm:$0xff]   ;;  %v4123_v18 = vld [vmem:[#allocation4 + $0x32c] ss:$16 sps:$4 sm:$0xff]   ;;  %v4137_v25 = vld [vmem:[%s4457_s5 + $0x50] sm:$0xff]  }
 0x1c1   :  { %v1761_v26 = vpop.f32.mrf.mxu1  ;;  %3546 = vmatprep.subr.bf16.mxu0 %v4133_v16  ;;  %v4135_v20 = vld [vmem:[%s4457_s5 + $0x58] sm:$0xff]  }
 0x1c2   :  { %v1762_v29 = vadd.f32 %v1761_v26, %v1719_v23  ;;  %v1803_v51 = vadd.f32 %v1802_v21, %v1760_v24  ;;  %v1806_v33 = vpop.f32.mrf.mxu0  ;;  %v1811_v38 = vmax.f32 %v1801_v32, 0.0  ;;  %v4121_v21 = vld [vmem:[#allocation4 + $0x328] ss:$16 sps:$4 sm:$0xff]   ;;  %v4138_v26 = vld [vmem:[%s4457_s5 + $0x10] sm:$0xff]  }
 0x1c3   :  { %v1763_v58 = vpop.f32.mrf.mxu1  ;;  %3547 = vmatpush3.bf16.msra.mxu0 %v4134_v19  ;;  %v4136_v23 = vld [vmem:[%s4457_s5 + $0x18] sm:$0xff]   ;;  %v4146_v32 = vld [vmem:[%s4457_s5 + $0xb0] sm:$0xff]  }
 0x1c4   :  { %v1805_v30 = vadd.f32 %v1804_v27, %v1762_v29  ;;  %v1764_v31 = vadd.f32 %v1763_v58, %v1721_v28  ;;  %v1812_v36 = vmax.f32 %v1803_v51, 0.0  ;;  %3548 = vmatprep.subr.bf16.mxu0 %v4135_v20  ;;  %v4124_v24 = vld [vmem:[#allocation4 + $0x308] ss:$16 sps:$4 sm:$0xff]   ;;  %v4141_v29 = vld [vmem:[%s4457_s5 + $0x40] sm:$0xff]  }
 0x1c5   :  { %v4139_v27 = vld [vmem:[%s4457_s5 + $0x48] sm:$0xff]   ;;  %v4142_v58 = vld [vmem:[%s4457_s5] sm:$0xff]   ;;  %v4143_v51 = vld [vmem:[%s4457_s5 + $0xf8] sm:$0xff]  }
 0x1c6   :  { %v1807_v14 = vadd.f32 %v1806_v33, %v1764_v31  ;;  %v1815_v34 = vmax.f32 %v1805_v30, 0.0  ;;  %v4140_v28 = vld [vmem:[%s4457_s5 + $0x8] sm:$0xff]   ;;  %v4144_v30 = vld [vmem:[%s4457_s5 + $0xb8] sm:$0xff]   ;;  %v4145_v31 = vld [vmem:[%s4457_s5 + $0xf0] sm:$0xff]  }
 0x1c7   :  { %3549 = vmatpush3.bf16.msra.mxu0 %v4136_v23  ;;  %v4147_v33 = vld [vmem:[%s4457_s5 + $0xe8] sm:$0xff]  }
 0x1c8   :  { %v1816_v37 = vmax.f32 %v1807_v14, 0.0  ;;  %v4332_v41 = vpack.c.bf16 %v1815_v34, %v1811_v38  ;;  %3550 = vmatprep.subr.bf16.mxu0 %v4137_v25  ;;  %v4148_v14 = vld [vmem:[%s4457_s5 + $0xa8] sm:$0xff]   ;;  %v4149_v34 = vld [vmem:[%s4457_s5 + $0xe0] sm:$0xff]   ;;  %v4152_v38 = vld [vmem:[%s4457_s5 + $0x98] sm:$0xff]  }
 0x1ca   :  { %v1820_v39 = vpack.c.bf16 %v1816_v37, %v1812_v36  ;;  %v4150_v36 = vld [vmem:[%s4457_s5 + $0xa0] sm:$0xff]   ;;  %v4151_v37 = vld [vmem:[%s4457_s5 + $0xd8] sm:$0xff]  }
 0x1cb   :  { %3551 = vmatpush3.bf16.msra.mxu0 %v4138_v26 }
 0x1cc   :  { %2686 = vmatprep.mubr.bf16.mxu1 %v1820_v39  ;;  %3552 = vmatprep.subr.bf16.mxu0 %v4139_v27 }
 0x1cd   :  { %2687 = vmatmul.mubr.bf16.vlgmr.msra.gmra.mxu1 %v4332_v41 }
 0x1ce   :  { %2741 = vmatpush1.bf16.msra.mxu1 %v4079_v40  ;;  %2772 = vmatprep.mubr.bf16.mxu1 %v1820_v39  ;;  %v4153_v39 = vld [vmem:[%s4457_s5 + $0xd0] sm:$0xff]  }
 0x1cf   :  { %2742 = vmatprep.subr.bf16.mxu1 %v4084_v42  ;;  %3553 = vmatpush3.bf16.msra.mxu0 %v4140_v28  ;;  %v4154_v40 = vld [vmem:[%s4457_s5 + $0x90] sm:$0xff]   ;;  %v4156_v42 = vld [vmem:[%s4457_s5 + $0x88] sm:$0xff]  }
 0x1d0   :  { %3554 = vmatprep.subr.bf16.mxu0 %v4141_v29 }
 0x1d2   :  { %2743 = vmatpush1.bf16.msra.mxu1 %v4082_v43  ;;  %v4157_v43 = vld [vmem:[%s4457_s5 + $0xc0] sm:$0xff]  }
 0x1d3   :  { %2744 = vmatprep.subr.bf16.mxu1 %v4087_v44  ;;  %3555 = vmatpush3.bf16.msra.mxu0 %v4142_v58  ;;  %v4158_v44 = vld [vmem:[%s4457_s5 + $0x80] sm:$0xff]  }
 0x1d6   :  { %2745 = vmatpush1.bf16.msra.mxu1 %v4085_v45 }
 0x1d7   :  { %2746 = vmatprep.subr.bf16.mxu1 %v4090_v46 }
 0x1da   :  { %2747 = vmatpush1.bf16.msra.mxu1 %v4088_v47  ;;  %v1949_v47 = vld [vmem:[%s4456_s4] sm:$0xf] }
 0x1db   :  { %2748 = vmatprep.subr.bf16.mxu1 %v4093_v48  ;;  %v1962_v15 = vrot.slane %v1949_v47, %v299_v3 }
 0x1de   :  { %2749 = vmatpush1.bf16.msra.mxu1 %v4091_v50  ;;  %v1958_v50 = vrot.slane %v1949_v47, %v295_v55 }
 0x1df   :  { %2750 = vmatprep.subr.bf16.mxu1 %v4096_v53  ;;  %v1954_v53 = vrot.slane %v1949_v47, %v291_v56 }
 0x1e2   :  { %2751 = vmatpush1.bf16.msra.mxu1 %v4094_v54 }
 0x1e3   :  { %2752 = vmatprep.subr.bf16.mxu1 %v4099_v57 }
 0x1e6   :  { %2753 = vmatpush1.bf16.msra.mxu1 %v4097_v11 }
 0x1e7   :  { %2754 = vmatprep.subr.bf16.mxu1 %v4102_v59 }
 0x1ea   :  { %2755 = vmatpush1.bf16.msra.mxu1 %v4100_v4 }
 0x1eb   :  { %2756 = vmatprep.subr.bf16.mxu1 %v4105_v49 }
 0x1ee   :  { %2757 = vmatpush2.bf16.msra.mxu1 %v4103_v60 }
 0x1ef   :  { %2758 = vmatprep.subr.bf16.mxu1 %v4108_v61 }
 0x1f2   :  { %2759 = vmatpush2.bf16.msra.mxu1 %v4106_v62 }
 0x1f3   :  { %2760 = vmatprep.subr.bf16.mxu1 %v4111_v63 }
 0x1f6   :  { %2761 = vmatpush2.bf16.msra.mxu1 %v4109_v0 }
 0x1f7   :  { %2762 = vmatprep.subr.bf16.mxu1 %v4114_v35 }
 0x1fa   :  { %2763 = vmatpush2.bf16.msra.mxu1 %v4112_v7 }
 0x1fb   :  { %2764 = vmatprep.subr.bf16.mxu1 %v4117_v8 }
 0x1fe   :  { %2765 = vmatpush2.bf16.msra.mxu1 %v4115_v12 }
 0x1ff   :  { %2766 = vmatprep.subr.bf16.mxu1 %v4120_v13  ;;  %v1966_v13 = vrot.slane %v1949_v47, %v303_v2 }
 0x202   :  { %2767 = vmatpush2.bf16.msra.mxu1 %v4118_v17 }
 0x203   :  { %2768 = vmatprep.subr.bf16.mxu1 %v4123_v18 }
 0x206   :  { %2769 = vmatpush2.bf16.msra.mxu1 %v4121_v21 }
 0x207   :  { %2770 = vmatprep.subr.bf16.mxu1 %v4126_v22 }
 0x20a   :  { %2771 = vmatpush2.bf16.msra.mxu1 %v4124_v24 }
 0x20b   :  { %3562 = vmatprep.subr.bf16.mxu1 %v4143_v51 }
 0x20d   :  { %2773 = vmatmul.mubr.bf16.vlgmr.msra.gmra.mxu1 %v4332_v41  ;;  %v4155_v41 = vld [vmem:[%s4457_s5 + $0xc8] sm:$0xff]  }
 0x20e   :  { %3563 = vmatpush3.bf16.msra.mxu1 %v4144_v30 }
 0x20f   :  { %3564 = vmatprep.subr.bf16.mxu1 %v4145_v31 }
 0x212   :  { %3565 = vmatpush3.bf16.msra.mxu1 %v4146_v32 }
 0x213   :  { %3566 = vmatprep.subr.bf16.mxu1 %v4147_v33 }
 0x216   :  { %3567 = vmatpush3.bf16.msra.mxu1 %v4148_v14  ;;  %v3507_v14 = vld [vmem:[%s4458_s6] ss:$0 sm:$0xff] }
 0x217   :  { %3568 = vmatprep.subr.bf16.mxu1 %v4149_v34 }
 0x21a   :  { %3569 = vmatpush3.bf16.msra.mxu1 %v4150_v36 }
 0x21b   :  { %3570 = vmatprep.subr.bf16.mxu1 %v4151_v37 }
 0x21e   :  { %3571 = vmatpush3.bf16.msra.mxu1 %v4152_v38 }
 0x21f   :  { %3572 = vmatprep.subr.bf16.mxu1 %v4153_v39 }
 0x222   :  { %3573 = vmatpush3.bf16.msra.mxu1 %v4154_v40 }
 0x223   :  { %3574 = vmatprep.subr.bf16.mxu1 %v4155_v41 }
 0x226   :  { %3575 = vmatpush3.bf16.msra.mxu1 %v4156_v42 }
 0x227   :  { %3576 = vmatprep.subr.bf16.mxu1 %v4157_v43 }
 0x22a   :  { %3577 = vmatpush3.bf16.msra.mxu1 %v4158_v44 }
 0x22c   :  { %v2645_v45 = vpop.f32.mrf.mxu0 }
 0x22d   :  { %v2646_v49 = vadd.f32 %v2645_v45, %v1954_v53 }
 0x22e   :  { %v2647_v46 = vpop.f32.mrf.mxu0 }
 0x22f   :  { %v2648_v59 = vadd.f32 %v2647_v46, %v1958_v50 }
 0x230   :  { %v2649_v48 = vpop.f32.mrf.mxu0 }
 0x231   :  { %v2650_v4 = vadd.f32 %v2649_v48, %v1954_v53 }
 0x232   :  { %v2651_v57 = vpop.f32.mrf.mxu0 }
 0x233   :  { %v2652_v61 = vadd.f32 %v2651_v57, %v1958_v50 }
 0x26c   :  { %v2731_v56 = vpop.f32.mrf.mxu0 }
 0x26d   :  { %v2732_v21 = vadd.f32 %v2731_v56, %v1962_v15 }
 0x26e   :  { %v2733_v10 = vpop.f32.mrf.mxu0 }
 0x26f   :  { %v2734_v19 = vadd.f32 %v2733_v10, %v1966_v13 }
 0x270   :  { %v2735_v12 = vpop.f32.mrf.mxu0 }
 0x271   :  { %v2736_v20 = vadd.f32 %v2735_v12, %v1962_v15 }
 0x272   :  { %v2737_v17 = vpop.f32.mrf.mxu0 }
 0x273   :  { %v2738_v23 = vadd.f32 %v2737_v17, %v1966_v13 }
 0x28d   :  { %v2688_v54 = vpop.f32.mrf.mxu1 }
 0x28e   :  { %v2689_v0 = vadd.f32 %v2688_v54, %v2646_v49 }
 0x28f   :  { %v2690_v11 = vpop.f32.mrf.mxu1 }
 0x290   :  { %v2691_v62 = vadd.f32 %v2690_v11, %v2648_v59  ;;  %v2783_v55 = vmax.f32 %v2689_v0, 0.0 }
 0x291   :  { %v2692_v60 = vpop.f32.mrf.mxu1 }
 0x292   :  { %v2693_v63 = vadd.f32 %v2692_v60, %v2650_v4  ;;  %v2784_v6 = vmax.f32 %v2691_v62, 0.0 }
 0x293   :  { %v2694_v35 = vpop.f32.mrf.mxu1 }
 0x294   :  { %v2695_v1 = vadd.f32 %v2694_v35, %v2652_v61  ;;  %v2787_v5 = vmax.f32 %v2693_v63, 0.0 }
 0x296   :  { %v2788_v7 = vmax.f32 %v2695_v1, 0.0  ;;  %v2791_v9 = vpack.c.bf16 %v2787_v5, %v2783_v55 }
 0x298   :  { %v2792_v8 = vpack.c.bf16 %v2788_v7, %v2784_v6 }
 0x29a   :  { %3090 = vmatprep.mubr.bf16.mxu0 %v2792_v8 }
 0x29b   :  { %3091 = vmatmul.mubr.bf16.vlgmr.msra.gmra.mxu0 %v2791_v9 }
 0x2cd   :  { %v2774_v16 = vpop.f32.mrf.mxu1 }
 0x2ce   :  { %v2775_v26 = vadd.f32 %v2774_v16, %v2732_v21 }
 0x2cf   :  { %v2776_v18 = vpop.f32.mrf.mxu1 }
 0x2d0   :  { %v2777_v24 = vadd.f32 %v2776_v18, %v2734_v19  ;;  %v2785_v2 = vmax.f32 %v2775_v26, 0.0 }
 0x2d1   :  { %v2778_v22 = vpop.f32.mrf.mxu1 }
 0x2d2   :  { %v2779_v25 = vadd.f32 %v2778_v22, %v2736_v20  ;;  %v2786_v58 = vmax.f32 %v2777_v24, 0.0 }
 0x2d3   :  { %v2780_v27 = vpop.f32.mrf.mxu1 }
 0x2d4   :  { %v2781_v28 = vadd.f32 %v2780_v27, %v2738_v23  ;;  %v2789_v29 = vmax.f32 %v2779_v25, 0.0 }
 0x2d6   :  { %v2790_v51 = vmax.f32 %v2781_v28, 0.0  ;;  %v2793_v52 = vpack.c.bf16 %v2789_v29, %v2785_v2 }
 0x2d8   :  { %v2794_v30 = vpack.c.bf16 %v2790_v51, %v2786_v58 }
 0x2da   :  { %3131 = vmatprep.mubr.bf16.mxu1 %v2794_v30 }
 0x2db   :  { %3132 = vmatmul.mubr.bf16.vlgmr.msra.gmra.mxu1 %v2793_v52 }
 0x35b   :  { %v3556_v3 = vpop.f32.mrf.mxu0 }
 0x35d   :  { %v3557_v31 = vpop.f32.mrf.mxu0 }
 0x35e   :  { %v3558_v33 = vadd.f32 %v3557_v31, %v3556_v3 }
 0x35f   :  { %v3559_v32 = vpop.f32.mrf.mxu0 }
 0x360   :  { %v3093_v38 = vadd.f32 %v3558_v33, %v3507_v14 }
 0x361   :  { %v3560_v34 = vpop.f32.mrf.mxu0 }
 0x362   :  { %v3561_v39 = vadd.f32 %v3560_v34, %v3559_v32 }
 0x364   :  { %v3096_v44 = vadd.f32 %v3561_v39, %v3507_v14 }
 0x39b   :  { %v3578_v36 = vpop.f32.mrf.mxu1 }
 0x39d   :  { %v3579_v37 = vpop.f32.mrf.mxu1 }
 0x39e   :  { %v3580_v40 = vadd.f32 %v3579_v37, %v3578_v36 }
 0x39f   :  { %v3581_v41 = vpop.f32.mrf.mxu1 }
 0x3a0   :  { %v3134_v42 = vadd.f32 %v3580_v40, %v3093_v38 }
 0x3a1   :  { %v3582_v43 = vpop.f32.mrf.mxu1 }
 0x3a2   :  { %3140 = vst [vmem:[%s4459_s7] sm:$0xff] %v3134_v42  ;;  %v3583_v45 = vadd.f32 %v3582_v43, %v3581_v41 }
 0x3a4   :  { %v3137_v46 = vadd.f32 %v3583_v45, %v3096_v44 }
 0x3a6   :  { %3141 = vst [vmem:[%s4459_s7 + $0x8] sm:$0xff] %v3137_v46 }
 0x3a7   :  { %3146 = vsyncpa [#allocation3], 1 }
 0x3a8   :  { %3147 = vsyncpa [#allocation5], 1 }

</bundles_post_ra>
